<compile_context>
chip_gen: v7x
topology: tpu7x:2x2x1
jax: 0.10.0
libtpu: 0.0.40
codegen_flags: <defaults>
</compile_context>

<pallas_src>
import math

import numpy as np
import jax
import jax.numpy as jnp
from jax import lax
from jax.experimental import pallas as pl
from jax.experimental.pallas import tpu as pltpu


_LANE = 128            # vreg lane width: last dims padded to multiples of this
_SUBLANE = 8           # f32 sublane width: channel dims padded to multiples of this
_HW_TILE = 2048        # HW_l chunk streamed per kv_psp grid step (VMEM-safe on v7x)
_Q_TILE = 1024         # query tile; <=1024 keeps double-buffered tiles in v7x VMEM
_VMEM_LIMIT = 64 * 1024 * 1024
_NEG_INF = -1e30

# dot_general dimension_numbers (2-D operands)
_NT_DIMS = (((1,), (1,)), ((), ()))   # contract last dims:   a @ b.T
_TN_DIMS = (((0,), (0,)), ((), ()))   # contract first dims:  a.T @ b


def _round_up(x, m):
    return ((x + m - 1) // m) * m


def _pad_axis(x, axis, target):
    pad = target - x.shape[axis]
    if pad <= 0:
        return x
    widths = [(0, 0)] * x.ndim
    widths[axis] = (0, pad)
    return jnp.pad(x, widths)


# ---------------------------------------------------------------------------
# Pallas kernels
# ---------------------------------------------------------------------------
def _kv_psp_kernel(low_ref, wkT_ref, bk_ref, wvT_ref, bv_ref, pool_ref,
                   kpsp_ref, vpsp_ref, kacc_ref, vacc_ref):
    """Grid (batch, HW_l chunk): fused K/V 1x1 convs + PSP pooling (accumulated)."""
    t = pl.program_id(1)

    @pl.when(t == 0)
    def _():
        kacc_ref[...] = jnp.zeros_like(kacc_ref)
        vacc_ref[...] = jnp.zeros_like(vacc_ref)

    low = low_ref[0]                                        # (Cl, thw)    bf16
    pool = pool_ref[...]                                    # (thw, S_pad) bf16
    # f_key: conv1x1 + BN (folded) + ReLU, channel-major: k^T = wk^T @ x^T
    kT = jnp.maximum(
        jnp.dot(wkT_ref[...], low, preferred_element_type=jnp.float32)
        + bk_ref[...], 0.0)                                 # (Kc_p, thw) f32
    # f_value: conv1x1 (no BN / ReLU)
    vT = (jnp.dot(wvT_ref[...], low, preferred_element_type=jnp.float32)
          + bv_ref[...])                                    # (Vc_p, thw) f32
    # PSP adaptive-avg-pool as a matmul with the pooling matrix.  Padded HW rows
    # of `pool` are all-zero, so the ReLU(bias) values on zero-padded spatial
    # positions contribute nothing.  Accumulate in f32 scratch.
    kacc_ref[...] += jnp.dot(kT.astype(pool.dtype), pool,
                             preferred_element_type=jnp.float32)
    vacc_ref[...] += jnp.dot(vT.astype(pool.dtype), pool,
                             preferred_element_type=jnp.float32)

    @pl.when(t == pl.num_programs(1) - 1)
    def _():
        kpsp_ref[0] = kacc_ref[...].astype(kpsp_ref.dtype)
        vpsp_ref[0] = vacc_ref[...].astype(vpsp_ref.dtype)


def _attn_out_kernel(high_ref, kpsp_ref, vpsp_ref, wqT_ref, bq_ref, smask_ref,
                     wctxT_ref, whighT_ref, bout_ref, out_ref):
    """Grid (batch, query tile): Q projection + attention + fused output convs."""
    highT = high_ref[0]                                     # (Ch, tq) bf16, channel-major
    # f_query: conv1x1 + BN + ReLU computed channel-major (no transpose of the
    # activation tile); the 1/sqrt(key_channels) scale is pre-folded into wq/bq.
    qT = jnp.maximum(
        jnp.dot(wqT_ref[...], highT, preferred_element_type=jnp.float32)
        + bq_ref[...], 0.0)                                 # (Kc_p, tq) f32
    # sim (tq, S_pad): contract Kc (dim 0 of both) via dimension_numbers.
    sim = lax.dot_general(qT.astype(jnp.bfloat16), kpsp_ref[0], _TN_DIMS,
                          preferred_element_type=jnp.float32)
    # Mask out the zero-padded pooled bins (-1e30 -> softmax weight 0), softmax in f32.
    sim = sim + smask_ref[...]
    sim = sim - jnp.max(sim, axis=-1, keepdims=True)
    p = jnp.exp(sim)
    p = p * pl.reciprocal(jnp.sum(p, axis=-1, keepdims=True), approx=True)
    # context (tq, Vc_p) = p @ value_psp^T ; value_psp stored as (Vc_p, S_pad).
    ctx = lax.dot_general(p.astype(jnp.bfloat16), vpsp_ref[0], _NT_DIMS,
                          preferred_element_type=jnp.float32)
    # self.W and the conv of conv_bn_dropout fused at init:
    #   out^T = (wW @ w2_ctx)^T @ ctx^T + w2_high^T @ high^T + b_out
    outT = lax.dot_general(wctxT_ref[...], ctx.astype(jnp.bfloat16), _NT_DIMS,
                           preferred_element_type=jnp.float32)   # (Co, tq)
    outT = outT + jnp.dot(whighT_ref[...], highT,
                          preferred_element_type=jnp.float32)
    out_ref[0] = (outT + bout_ref[...]).astype(out_ref.dtype)   # lane-dense NCHW store


# ---------------------------------------------------------------------------
# pallas_call wrappers
# ---------------------------------------------------------------------------
def kv_psp(low_f, kp):
    N, Cl, HWl_pad = low_f.shape
    Kc_p = kp["wkT"].shape[0]
    Vc_p = kp["wvT"].shape[0]
    S_pad = kp["pool_mat"].shape[1]
    thw = min(_HW_TILE, HWl_pad)           # HWl_pad is a multiple of thw by construction
    grid = (N, HWl_pad // thw)
    # TODO(synk): on v7x with N == 1, add a second 'parallel' split (e.g. over
    # Kc/Vc output blocks or partial-HW accumulators) so both TensorCores stay busy.
    return pl.pallas_call(
        _kv_psp_kernel,
        out_shape=(jax.ShapeDtypeStruct((N, Kc_p, S_pad), jnp.bfloat16),
                   jax.ShapeDtypeStruct((N, Vc_p, S_pad), jnp.bfloat16)),
        grid=grid,
        in_specs=[
            pl.BlockSpec((1, Cl, thw), lambda b, t: (b, 0, t)),
            pl.BlockSpec((Kc_p, Cl), lambda b, t: (0, 0)),
            pl.BlockSpec((Kc_p, 1), lambda b, t: (0, 0)),
            pl.BlockSpec((Vc_p, Cl), lambda b, t: (0, 0)),
            pl.BlockSpec((Vc_p, 1), lambda b, t: (0, 0)),
            pl.BlockSpec((thw, S_pad), lambda b, t: (t, 0)),
        ],
        out_specs=(pl.BlockSpec((1, Kc_p, S_pad), lambda b, t: (b, 0, 0)),
                   pl.BlockSpec((1, Vc_p, S_pad), lambda b, t: (b, 0, 0))),
        scratch_shapes=[pltpu.VMEM((Kc_p, S_pad), jnp.float32),
                        pltpu.VMEM((Vc_p, S_pad), jnp.float32)],
        compiler_params=pltpu.CompilerParams(
            dimension_semantics=("parallel", "arbitrary"),
            vmem_limit_bytes=_VMEM_LIMIT),
    )(low_f, kp["wkT"], kp["bk"], kp["wvT"], kp["bv"], kp["pool_mat"])


def attn_out(high_f, kpsp, vpsp, kp, tq):
    N, Ch, HWh_pad = high_f.shape
    _, Kc_p, S_pad = kpsp.shape
    Vc_p = vpsp.shape[1]
    Co = kp["whighT"].shape[0]
    grid = (N, HWh_pad // tq)
    # NOTE: if profiling on v5e shows exposed DMA on the streaming high_f input,
    # add pipeline_mode=pl.Buffered(3) to its BlockSpec.
    return pl.pallas_call(
        _attn_out_kernel,
        out_shape=jax.ShapeDtypeStruct((N, Co, HWh_pad), jnp.float32),
        grid=grid,
        in_specs=[
            pl.BlockSpec((1, Ch, tq), lambda b, qi: (b, 0, qi)),
            pl.BlockSpec((1, Kc_p, S_pad), lambda b, qi: (b, 0, 0)),
            pl.BlockSpec((1, Vc_p, S_pad), lambda b, qi: (b, 0, 0)),
            pl.BlockSpec((Kc_p, Ch), lambda b, qi: (0, 0)),
            pl.BlockSpec((Kc_p, 1), lambda b, qi: (0, 0)),
            pl.BlockSpec((1, S_pad), lambda b, qi: (0, 0)),
            pl.BlockSpec((Co, Vc_p), lambda b, qi: (0, 0)),
            pl.BlockSpec((Co, Ch), lambda b, qi: (0, 0)),
            pl.BlockSpec((Co, 1), lambda b, qi: (0, 0)),
        ],
        out_specs=pl.BlockSpec((1, Co, tq), lambda b, qi: (b, 0, qi)),
        compiler_params=pltpu.CompilerParams(
            dimension_semantics=("parallel", "parallel"),
            vmem_limit_bytes=_VMEM_LIMIT),
    )(high_f, kpsp, vpsp, kp["wqT_s"], kp["bq_s"], kp["smask"],
      kp["wctxT"], kp["whighT"], kp["bout"])


def afnb_forward(low, high, kp):
    N, Cl, Hl, Wl = low.shape
    _, Ch, Hh, Wh = high.shape
    Co = kp["whighT"].shape[0]
    HWl, HWh = Hl * Wl, Hh * Wh

    # channel-major flatten (free reshape) + bf16 operand cast (halves HBM stream bytes)
    low_f = low.reshape(N, Cl, HWl).astype(jnp.bfloat16)
    HWl_pad = kp["pool_mat"].shape[0]
    if HWl_pad > HWl:      # zero-pad: padded positions have zero pooling weight
        low_f = jnp.pad(low_f, ((0, 0), (0, 0), (0, HWl_pad - HWl)))

    high_f = high.reshape(N, Ch, HWh).astype(jnp.bfloat16)
    tq = min(_Q_TILE, _round_up(HWh, _LANE))
    HWh_pad = _round_up(HWh, tq)
    if HWh_pad > HWh:      # padded query columns are sliced away below
        high_f = jnp.pad(high_f, ((0, 0), (0, 0), (0, HWh_pad - HWh)))

    kpsp, vpsp = kv_psp(low_f, kp)
    out_f = attn_out(high_f, kpsp, vpsp, kp, tq)
    if HWh_pad > HWh:
        out_f = out_f[:, :, :HWh]
    return out_f.reshape(N, Co, Hh, Wh)      # already NCHW; no transpose needed


# ---------------------------------------------------------------------------
# Glue: PSP pooling matrix, BN folding, deterministic params, weight fusion
# ---------------------------------------------------------------------------
def psp_pool_matrix(H, W, sizes):
    """Adaptive-avg-pool (PyTorch semantics) expressed as a (H*W, sum(s*s)) matrix."""
    cols = []
    for s in sizes:
        for i in range(s):
            h0, h1 = (i * H) // s, math.ceil((i + 1) * H / s)
            for j in range(s):
                w0, w1 = (j * W) // s, math.ceil((j + 1) * W / s)
                m = np.zeros((H, W), np.float32)
                m[h0:h1, w0:w1] = 1.0 / float((h1 - h0) * (w1 - w0))
                cols.append(m.reshape(-1))
    return np.stack(cols, axis=1).astype(np.float32)


def fold_bn(w, b, gamma, beta, mean, var, eps=1e-5):
    """Fold inference-mode BatchNorm into the preceding 1x1 conv (matmul) weights."""
    s = gamma / jnp.sqrt(var + eps)
    return w * s[None, :], (b - mean) * s + beta


def init_params(key, Cl, Ch, Co, Kc, Vc, Hl, Wl, psp_sizes):
    keys = jax.random.split(key, 8)

    def conv(k, cin, cout, scale=0.1):
        kw, kb = jax.random.split(k)
        return (scale * jax.random.normal(kw, (cin, cout), jnp.float32),
                scale * jax.random.normal(kb, (cout,), jnp.float32))

    def bn(k, c):
        k1, k2, k3, k4 = jax.random.split(k, 4)
        return (1.0 + 0.1 * jax.random.normal(k1, (c,), jnp.float32),
                0.1 * jax.random.normal(k2, (c,), jnp.float32),
                0.1 * jax.random.normal(k3, (c,), jnp.float32),
                1.0 + 0.1 * jnp.abs(jax.random.normal(k4, (c,), jnp.float32)))

    wq, bq = conv(keys[0], Ch, Kc)            # f_query: 1x1 conv + BN + ReLU
    wq, bq = fold_bn(wq, bq, *bn(keys[1], Kc))
    wk, bk = conv(keys[2], Cl, Kc)            # f_key: 1x1 conv + BN + ReLU
    wk, bk = fold_bn(wk, bk, *bn(keys[3], Kc))
    wv, bv = conv(keys[4], Cl, Vc)            # f_value: 1x1 conv
    # NOTE: original module zero-inits self.W (weight & bias); random init here
    # so the attention path is exercised with non-trivial values.
    wW, bW = conv(keys[5], Vc, Co)            # W: 1x1 conv value_channels -> out
    w2, b2 = conv(keys[6], Co + Ch, Co)       # conv_bn_dropout: 1x1 conv + BN (+ Dropout2d)
    w2, b2 = fold_bn(w2, b2, *bn(keys[7], Co))
    # Dropout2d(p=0.05) is identity at inference time.

    pool_mat = jnp.asarray(psp_pool_matrix(Hl, Wl, psp_sizes))   # (HWl, S) unpadded
    return dict(wq=wq, bq=bq, wk=wk, bk=bk, wv=wv, bv=bv,
                wW=wW, bW=bW, w2=w2, b2=b2, pool_mat=pool_mat)


def prepare_kernel_params(params, HWl):
    """Pad / transpose / fuse the (BN-folded) torch-style weights for the kernels.

    - scale = key_channels**-0.5 folded into wq/bq (ReLU(s*x) = s*ReLU(x), s>0).
    - self.W and the conv of conv_bn_dropout fused algebraically:
        out = ctx @ (wW @ w2[:Co]) + high @ w2[Co:] + (bW @ w2[:Co] + b2)
    - pooled axis S padded to a lane multiple (110 -> 128); Kc/Vc padded to
      sublane multiples (for production channel counts use 128/256 here).
    - streamed matmul operands stored in bf16; biases / softmax mask stay f32.
    """
    wq, bq = params["wq"], params["bq"]
    wk, bk = params["wk"], params["bk"]
    wv, bv = params["wv"], params["bv"]
    Kc, Vc = wq.shape[1], wv.shape[1]
    Co = params["wW"].shape[1]
    scale = Kc ** (-0.5)

    w2, b2 = params["w2"], params["b2"]
    w2_ctx, w2_high = w2[:Co, :], w2[Co:, :]
    wctx = params["wW"] @ w2_ctx                        # (Vc, Co)
    bout = params["bW"] @ w2_ctx + b2                   # (Co,)

    Kc_p = _round_up(Kc, _SUBLANE)
    Vc_p = _round_up(Vc, _SUBLANE)

    pm = params["pool_mat"]                             # (HWl, S) unpadded
    S = pm.shape[1]
    S_pad = _round_up(S, _LANE)
    HWl_128 = _round_up(HWl, _LANE)
    thw = min(_HW_TILE, HWl_128)
    HWl_pad = _round_up(HWl, thw)
    pm = jnp.pad(pm, ((0, HWl_pad - HWl), (0, S_pad - S)))
    # additive softmax mask: 0 on valid pooled bins, -1e30 on padded bins
    smask = jnp.where(jnp.arange(S_pad) < S, 0.0, _NEG_INF).reshape(1, S_pad)

    bf16, f32 = jnp.bfloat16, jnp.float32
    return dict(
        wqT_s=_pad_axis((wq * scale).T, 0, Kc_p).astype(bf16),            # (Kc_p, Ch)
        bq_s=_pad_axis((bq * scale).reshape(-1, 1), 0, Kc_p).astype(f32), # (Kc_p, 1)
        wkT=_pad_axis(wk.T, 0, Kc_p).astype(bf16),                        # (Kc_p, Cl)
        bk=_pad_axis(bk.reshape(-1, 1), 0, Kc_p).astype(f32),             # (Kc_p, 1)
        wvT=_pad_axis(wv.T, 0, Vc_p).astype(bf16),                        # (Vc_p, Cl)
        bv=_pad_axis(bv.reshape(-1, 1), 0, Vc_p).astype(f32),             # (Vc_p, 1)
        wctxT=_pad_axis(wctx.T, 1, Vc_p).astype(bf16),                    # (Co, Vc_p)
        whighT=w2_high.T.astype(bf16),                                    # (Co, Ch)
        bout=bout.reshape(-1, 1).astype(f32),                             # (Co, 1)
        pool_mat=pm.astype(bf16),                                         # (HWl_pad, S_pad)
        smask=smask.astype(f32),                                          # (1, S_pad)
    )


# ---------------------------------------------------------------------------
# Pure-JAX reference (original un-fused math) for a correctness check
# ---------------------------------------------------------------------------
def afnb_reference(low, high, params):
    hp = jax.lax.Precision.HIGHEST
    N, Cl, Hl, Wl = low.shape
    _, Ch, Hh, Wh = high.shape
    low_rows = low.transpose(0, 2, 3, 1).reshape(N * Hl * Wl, Cl)
    high_rows = high.transpose(0, 2, 3, 1).reshape(N * Hh * Wh, Ch)
    q = jax.nn.relu(jnp.dot(high_rows, params["wq"], precision=hp) + params["bq"])
    k = jax.nn.relu(jnp.dot(low_rows, params["wk"], precision=hp) + params["bk"])
    v = jnp.dot(low_rows, params["wv"], precision=hp) + params["bv"]
    Kc, Vc = q.shape[1], v.shape[1]
    P = params["pool_mat"]
    k_psp = jnp.einsum("nhk,hs->nks", k.reshape(N, Hl * Wl, Kc), P, precision=hp)
    v_psp = jnp.einsum("nhv,hs->nsv", v.reshape(N, Hl * Wl, Vc), P, precision=hp)
    sim = jnp.einsum("nqk,nks->nqs", q.reshape(N, Hh * Wh, Kc), k_psp,
                     precision=hp) * (Kc ** -0.5)
    p = jax.nn.softmax(sim, axis=-1)
    ctx = jnp.einsum("nqs,nsv->nqv", p, v_psp, precision=hp)
    ctx_rows = jnp.dot(ctx.reshape(N * Hh * Wh, Vc), params["wW"],
                       precision=hp) + params["bW"]
    cat = jnp.concatenate([ctx_rows, high_rows], axis=-1)
    out = jnp.dot(cat, params["w2"], precision=hp) + params["b2"]
    return out.reshape(N, Hh, Wh, -1).transpose(0, 3, 1, 2)


if __name__ == "__main__":
    # small shapes consistent with AFNB(low_in=8, high_in=8, out=8, key=4, value=4)
    N, Cl, Ch, Co, Kc, Vc = 2, 8, 8, 8, 4, 4
    Hl = Wl = 16
    Hh = Wh = 16
    psp_sizes = (1, 3, 6, 8)   # -> S = 110, padded to 128 in the kernels

    key = jax.random.PRNGKey(0)
    k_low, k_high, k_params = jax.random.split(key, 3)
    low = jax.random.normal(k_low, (N, Cl, Hl, Wl), jnp.float32)     # low_feats  (NCHW)
    high = jax.random.normal(k_high, (N, Ch, Hh, Wh), jnp.float32)   # high_feats (NCHW)

    params = init_params(k_params, Cl, Ch, Co, Kc, Vc, Hl, Wl, psp_sizes)
    kparams = prepare_kernel_params(params, Hl * Wl)

    fwd = jax.jit(afnb_forward)
    out = jax.block_until_ready(fwd(low, high, kparams))
    ref = jax.block_until_ready(afnb_reference(low, high, params))

    assert out.shape == (N, Co, Hh, Wh), out.shape
    # bf16 matmul operands (f32 accumulation) + approx reciprocal -> slightly
    # looser tolerance than pure-f32.
    err = np.max(np.abs(np.asarray(out) - np.asarray(ref)))
    assert np.allclose(np.asarray(out), np.asarray(ref), rtol=2e-2, atol=2e-2), err
    print("KERNEL_OK")
</pallas_src>

<mosaic_0001>
module attributes {stable_mosaic.version = 11 : i64} {
  func.func @_kv_psp_kernel(%arg0: i32, %arg1: i32, %arg2: memref<1x8x256xbf16, #tpu.memory_space<vmem>>, %arg3: memref<8x8xbf16, #tpu.memory_space<vmem>>, %arg4: memref<8x1xf32, #tpu.memory_space<vmem>>, %arg5: memref<8x8xbf16, #tpu.memory_space<vmem>>, %arg6: memref<8x1xf32, #tpu.memory_space<vmem>>, %arg7: memref<256x128xbf16, #tpu.memory_space<vmem>>, %arg8: memref<1x8x128xbf16, #tpu.memory_space<vmem>>, %arg9: memref<1x8x128xbf16, #tpu.memory_space<vmem>>, %arg10: memref<8x128xf32, #tpu.memory_space<vmem>>, %arg11: memref<8x128xf32, #tpu.memory_space<vmem>>) attributes {dimension_semantics = [#tpu.dimension_semantics<parallel>, #tpu.dimension_semantics<arbitrary>], iteration_bounds = array<i64: 2, 1>, scalar_prefetch = 0 : i64, scratch_operands = 2 : i64, tpu.core_type = #tpu.core_type<tc>, window_params = [{transform_indices = @transform_0, window_bounds = array<i64: 1, 8, 256>}, {pipeline_mode = #tpu.pipeline_mode<synchronous>, transform_indices = @transform_1, window_bounds = array<i64: 8, 8>}, {pipeline_mode = #tpu.pipeline_mode<synchronous>, transform_indices = @transform_2, window_bounds = array<i64: 8, 1>}, {pipeline_mode = #tpu.pipeline_mode<synchronous>, transform_indices = @transform_3, window_bounds = array<i64: 8, 8>}, {pipeline_mode = #tpu.pipeline_mode<synchronous>, transform_indices = @transform_4, window_bounds = array<i64: 8, 1>}, {transform_indices = @transform_5, window_bounds = array<i64: 256, 128>}, {transform_indices = @transform_6, window_bounds = array<i64: 1, 8, 128>}, {transform_indices = @transform_7, window_bounds = array<i64: 1, 8, 128>}]} {
    %c0_i32 = arith.constant 0 : i32
    %0 = arith.cmpi eq, %arg1, %c0_i32 : i32
    %1 = arith.extui %0 : i1 to i32
    %c0_i32_0 = arith.constant 0 : i32
    %2 = arith.cmpi ne, %1, %c0_i32_0 : i32
    scf.if %2 {
      %cst_27 = arith.constant 0.000000e+00 : f32
      %31 = vector.broadcast %cst_27 : f32 to vector<8x128xf32>
      %c0_28 = arith.constant 0 : index
      %c0_29 = arith.constant 0 : index
      %32 = vector.load %arg10[%c0_28, %c0_29] : memref<8x128xf32, #tpu.memory_space<vmem>>, vector<8x128xf32>
      tpu.vector_store %arg10[%c0_28, %c0_29], %31 {strides = array<i32>} : memref<8x128xf32, #tpu.memory_space<vmem>>, vector<8x128xf32>,
      %cst_30 = arith.constant 0.000000e+00 : f32
      %33 = vector.broadcast %cst_30 : f32 to vector<8x128xf32>
      %c0_31 = arith.constant 0 : index
      %c0_32 = arith.constant 0 : index
      %34 = vector.load %arg11[%c0_31, %c0_32] : memref<8x128xf32, #tpu.memory_space<vmem>>, vector<8x128xf32>
      tpu.vector_store %arg11[%c0_31, %c0_32], %33 {strides = array<i32>} : memref<8x128xf32, #tpu.memory_space<vmem>>, vector<8x128xf32>,
    } else {
    }
    %c0 = arith.constant 0 : index
    %c0_1 = arith.constant 0 : index
    %c0_2 = arith.constant 0 : index
    %3 = vector.load %arg2[%c0, %c0_1, %c0_2] : memref<1x8x256xbf16, #tpu.memory_space<vmem>>, vector<1x8x256xbf16>
    %4 = vector.shape_cast %3 : vector<1x8x256xbf16> to vector<8x256xbf16>
    %c0_3 = arith.constant 0 : index
    %c0_4 = arith.constant 0 : index
    %5 = vector.load %arg7[%c0_3, %c0_4] : memref<256x128xbf16, #tpu.memory_space<vmem>>, vector<256x128xbf16>
    %c0_5 = arith.constant 0 : index
    %c0_6 = arith.constant 0 : index
    %6 = vector.load %arg3[%c0_5, %c0_6] : memref<8x8xbf16, #tpu.memory_space<vmem>>, vector<8x8xbf16>
    %cst = arith.constant dense<0.000000e+00> : vector<8x256xf32>
    %7 = tpu.matmul %6, %4, %cst {dimension_numbers = #tpu.dot_dimension_numbers<[1], [0], [0], [1], [0, 0, 1, 1], [], []>} : vector<8x8xbf16>, vector<8x256xbf16>, vector<8x256xf32> -> vector<8x256xf32>
    %c0_7 = arith.constant 0 : index
    %c0_8 = arith.constant 0 : index
    %8 = vector.load %arg4[%c0_7, %c0_8] : memref<8x1xf32, #tpu.memory_space<vmem>>, vector<8x1xf32>
    %9 = vector.broadcast %8 : vector<8x1xf32> to vector<8x256xf32>
    %10 = arith.addf %7, %9 : vector<8x256xf32>
    %cst_9 = arith.constant 0.000000e+00 : f32
    %11 = vector.broadcast %cst_9 : f32 to vector<8x256xf32>
    %12 = arith.maximumf %10, %11 : vector<8x256xf32>
    %c0_10 = arith.constant 0 : index
    %c0_11 = arith.constant 0 : index
    %13 = vector.load %arg5[%c0_10, %c0_11] : memref<8x8xbf16, #tpu.memory_space<vmem>>, vector<8x8xbf16>
    %cst_12 = arith.constant dense<0.000000e+00> : vector<8x256xf32>
    %14 = tpu.matmul %13, %4, %cst_12 {dimension_numbers = #tpu.dot_dimension_numbers<[1], [0], [0], [1], [0, 0, 1, 1], [], []>} : vector<8x8xbf16>, vector<8x256xbf16>, vector<8x256xf32> -> vector<8x256xf32>
    %c0_13 = arith.constant 0 : index
    %c0_14 = arith.constant 0 : index
    %15 = vector.load %arg6[%c0_13, %c0_14] : memref<8x1xf32, #tpu.memory_space<vmem>>, vector<8x1xf32>
    %16 = vector.broadcast %15 : vector<8x1xf32> to vector<8x256xf32>
    %17 = arith.addf %14, %16 : vector<8x256xf32>
    %c0_15 = arith.constant 0 : index
    %c0_16 = arith.constant 0 : index
    %18 = vector.load %arg10[%c0_15, %c0_16] : memref<8x128xf32, #tpu.memory_space<vmem>>, vector<8x128xf32>
    %19 = arith.truncf %12 : vector<8x256xf32> to vector<8x256xbf16>
    %cst_17 = arith.constant dense<0.000000e+00> : vector<8x128xf32>
    %20 = tpu.matmul %19, %5, %cst_17 {dimension_numbers = #tpu.dot_dimension_numbers<[1], [0], [0], [1], [0, 0, 1, 1], [], []>} : vector<8x256xbf16>, vector<256x128xbf16>, vector<8x128xf32> -> vector<8x128xf32>
    %21 = arith.addf %18, %20 : vector<8x128xf32>
    %c0_18 = arith.constant 0 : index
    %c0_19 = arith.constant 0 : index
    %22 = vector.load %arg10[%c0_18, %c0_19] : memref<8x128xf32, #tpu.memory_space<vmem>>, vector<8x128xf32>
    tpu.vector_store %arg10[%c0_18, %c0_19], %21 {strides = array<i32>} : memref<8x128xf32, #tpu.memory_space<vmem>>, vector<8x128xf32>,
    %c0_20 = arith.constant 0 : index
    %c0_21 = arith.constant 0 : index
    %23 = vector.load %arg11[%c0_20, %c0_21] : memref<8x128xf32, #tpu.memory_space<vmem>>, vector<8x128xf32>
    %24 = arith.truncf %17 : vector<8x256xf32> to vector<8x256xbf16>
    %cst_22 = arith.constant dense<0.000000e+00> : vector<8x128xf32>
    %25 = tpu.matmul %24, %5, %cst_22 {dimension_numbers = #tpu.dot_dimension_numbers<[1], [0], [0], [1], [0, 0, 1, 1], [], []>} : vector<8x256xbf16>, vector<256x128xbf16>, vector<8x128xf32> -> vector<8x128xf32>
    %26 = arith.addf %23, %25 : vector<8x128xf32>
    %c0_23 = arith.constant 0 : index
    %c0_24 = arith.constant 0 : index
    %27 = vector.load %arg11[%c0_23, %c0_24] : memref<8x128xf32, #tpu.memory_space<vmem>>, vector<8x128xf32>
    tpu.vector_store %arg11[%c0_23, %c0_24], %26 {strides = array<i32>} : memref<8x128xf32, #tpu.memory_space<vmem>>, vector<8x128xf32>,
    %c0_i32_25 = arith.constant 0 : i32
    %28 = arith.cmpi eq, %arg1, %c0_i32_25 : i32
    %29 = arith.extui %28 : i1 to i32
    %c0_i32_26 = arith.constant 0 : i32
    %30 = arith.cmpi ne, %29, %c0_i32_26 : i32
    scf.if %30 {
      %c0_27 = arith.constant 0 : index
      %c0_28 = arith.constant 0 : index
      %31 = vector.load %arg10[%c0_27, %c0_28] : memref<8x128xf32, #tpu.memory_space<vmem>>, vector<8x128xf32>
      %32 = arith.truncf %31 : vector<8x128xf32> to vector<8x128xbf16>
      %c0_29 = arith.constant 0 : index
      %c0_30 = arith.constant 0 : index
      %c0_31 = arith.constant 0 : index
      %33 = vector.load %arg8[%c0_29, %c0_30, %c0_31] : memref<1x8x128xbf16, #tpu.memory_space<vmem>>, vector<1x8x128xbf16>
      %34 = vector.shape_cast %33 : vector<1x8x128xbf16> to vector<8x128xbf16>
      %35 = vector.shape_cast %32 : vector<8x128xbf16> to vector<1x8x128xbf16>
      tpu.vector_store %arg8[%c0_29, %c0_30, %c0_31], %35 {strides = array<i32>} : memref<1x8x128xbf16, #tpu.memory_space<vmem>>, vector<1x8x128xbf16>,
      %c0_32 = arith.constant 0 : index
      %c0_33 = arith.constant 0 : index
      %36 = vector.load %arg11[%c0_32, %c0_33] : memref<8x128xf32, #tpu.memory_space<vmem>>, vector<8x128xf32>
      %37 = arith.truncf %36 : vector<8x128xf32> to vector<8x128xbf16>
      %c0_34 = arith.constant 0 : index
      %c0_35 = arith.constant 0 : index
      %c0_36 = arith.constant 0 : index
      %38 = vector.load %arg9[%c0_34, %c0_35, %c0_36] : memref<1x8x128xbf16, #tpu.memory_space<vmem>>, vector<1x8x128xbf16>
      %39 = vector.shape_cast %38 : vector<1x8x128xbf16> to vector<8x128xbf16>
      %40 = vector.shape_cast %37 : vector<8x128xbf16> to vector<1x8x128xbf16>
      tpu.vector_store %arg9[%c0_34, %c0_35, %c0_36], %40 {strides = array<i32>} : memref<1x8x128xbf16, #tpu.memory_space<vmem>>, vector<1x8x128xbf16>,
    } else {
    }
    return
  }
  func.func @transform_0(%arg0: i32, %arg1: i32) -> (i32, i32, i32) {
    %c0_i32 = arith.constant 0 : i32
    %c0_i32_0 = arith.constant 0 : i32
    return %arg0, %c0_i32, %arg1 : i32, i32, i32
  }
  func.func @transform_1(%arg0: i32, %arg1: i32) -> (i32, i32) {
    %c0_i32 = arith.constant 0 : i32
    %c0_i32_0 = arith.constant 0 : i32
    %c0_i32_1 = arith.constant 0 : i32
    return %c0_i32, %c0_i32_0 : i32, i32
  }
  func.func @transform_2(%arg0: i32, %arg1: i32) -> (i32, i32) {
    %c0_i32 = arith.constant 0 : i32
    %c0_i32_0 = arith.constant 0 : i32
    %c0_i32_1 = arith.constant 0 : i32
    return %c0_i32, %c0_i32_0 : i32, i32
  }
  func.func @transform_3(%arg0: i32, %arg1: i32) -> (i32, i32) {
    %c0_i32 = arith.constant 0 : i32
    %c0_i32_0 = arith.constant 0 : i32
    %c0_i32_1 = arith.constant 0 : i32
    return %c0_i32, %c0_i32_0 : i32, i32
  }
  func.func @transform_4(%arg0: i32, %arg1: i32) -> (i32, i32) {
    %c0_i32 = arith.constant 0 : i32
    %c0_i32_0 = arith.constant 0 : i32
    %c0_i32_1 = arith.constant 0 : i32
    return %c0_i32, %c0_i32_0 : i32, i32
  }
  func.func @transform_5(%arg0: i32, %arg1: i32) -> (i32, i32) {
    %c0_i32 = arith.constant 0 : i32
    %c0_i32_0 = arith.constant 0 : i32
    return %arg1, %c0_i32 : i32, i32
  }
  func.func @transform_6(%arg0: i32, %arg1: i32) -> (i32, i32, i32) {
    %c0_i32 = arith.constant 0 : i32
    %c0_i32_0 = arith.constant 0 : i32
    %c0_i32_1 = arith.constant 0 : i32
    return %arg0, %c0_i32, %c0_i32_0 : i32, i32, i32
  }
  func.func @transform_7(%arg0: i32, %arg1: i32) -> (i32, i32, i32) {
    %c0_i32 = arith.constant 0 : i32
    %c0_i32_0 = arith.constant 0 : i32
    %c0_i32_1 = arith.constant 0 : i32
    return %arg0, %c0_i32, %c0_i32_0 : i32, i32, i32
  }
}

module attributes {stable_mosaic.version = 11 : i64} {
  func.func @_attn_out_kernel(%arg0: i32, %arg1: i32, %arg2: memref<1x8x256xbf16, #tpu.memory_space<vmem>>, %arg3: memref<1x8x128xbf16, #tpu.memory_space<vmem>>, %arg4: memref<1x8x128xbf16, #tpu.memory_space<vmem>>, %arg5: memref<8x8xbf16, #tpu.memory_space<vmem>>, %arg6: memref<8x1xf32, #tpu.memory_space<vmem>>, %arg7: memref<1x128xf32, #tpu.memory_space<vmem>>, %arg8: memref<8x8xbf16, #tpu.memory_space<vmem>>, %arg9: memref<8x8xbf16, #tpu.memory_space<vmem>>, %arg10: memref<8x1xf32, #tpu.memory_space<vmem>>, %arg11: memref<1x8x256xf32, #tpu.memory_space<vmem>>) attributes {dimension_semantics = [#tpu.dimension_semantics<parallel>, #tpu.dimension_semantics<parallel>], iteration_bounds = array<i64: 2, 1>, scalar_prefetch = 0 : i64, scratch_operands = 0 : i64, tpu.core_type = #tpu.core_type<tc>, window_params = [{transform_indices = @transform_0, window_bounds = array<i64: 1, 8, 256>}, {transform_indices = @transform_1, window_bounds = array<i64: 1, 8, 128>}, {transform_indices = @transform_2, window_bounds = array<i64: 1, 8, 128>}, {pipeline_mode = #tpu.pipeline_mode<synchronous>, transform_indices = @transform_3, window_bounds = array<i64: 8, 8>}, {pipeline_mode = #tpu.pipeline_mode<synchronous>, transform_indices = @transform_4, window_bounds = array<i64: 8, 1>}, {pipeline_mode = #tpu.pipeline_mode<synchronous>, transform_indices = @transform_5, window_bounds = array<i64: 1, 128>}, {pipeline_mode = #tpu.pipeline_mode<synchronous>, transform_indices = @transform_6, window_bounds = array<i64: 8, 8>}, {pipeline_mode = #tpu.pipeline_mode<synchronous>, transform_indices = @transform_7, window_bounds = array<i64: 8, 8>}, {pipeline_mode = #tpu.pipeline_mode<synchronous>, transform_indices = @transform_8, window_bounds = array<i64: 8, 1>}, {transform_indices = @transform_9, window_bounds = array<i64: 1, 8, 256>}]} {
    %c0 = arith.constant 0 : index
    %c0_0 = arith.constant 0 : index
    %c0_1 = arith.constant 0 : index
    %0 = vector.load %arg2[%c0, %c0_0, %c0_1] : memref<1x8x256xbf16, #tpu.memory_space<vmem>>, vector<1x8x256xbf16>
    %1 = vector.shape_cast %0 : vector<1x8x256xbf16> to vector<8x256xbf16>
    %c0_2 = arith.constant 0 : index
    %c0_3 = arith.constant 0 : index
    %2 = vector.load %arg5[%c0_2, %c0_3] : memref<8x8xbf16, #tpu.memory_space<vmem>>, vector<8x8xbf16>
    %cst = arith.constant dense<0.000000e+00> : vector<8x256xf32>
    %3 = tpu.matmul %2, %1, %cst {dimension_numbers = #tpu.dot_dimension_numbers<[1], [0], [0], [1], [0, 0, 1, 1], [], []>} : vector<8x8xbf16>, vector<8x256xbf16>, vector<8x256xf32> -> vector<8x256xf32>
    %c0_4 = arith.constant 0 : index
    %c0_5 = arith.constant 0 : index
    %4 = vector.load %arg6[%c0_4, %c0_5] : memref<8x1xf32, #tpu.memory_space<vmem>>, vector<8x1xf32>
    %5 = vector.broadcast %4 : vector<8x1xf32> to vector<8x256xf32>
    %6 = arith.addf %3, %5 : vector<8x256xf32>
    %cst_6 = arith.constant 0.000000e+00 : f32
    %7 = vector.broadcast %cst_6 : f32 to vector<8x256xf32>
    %8 = arith.maximumf %6, %7 : vector<8x256xf32>
    %9 = arith.truncf %8 : vector<8x256xf32> to vector<8x256xbf16>
    %c0_7 = arith.constant 0 : index
    %c0_8 = arith.constant 0 : index
    %c0_9 = arith.constant 0 : index
    %10 = vector.load %arg3[%c0_7, %c0_8, %c0_9] : memref<1x8x128xbf16, #tpu.memory_space<vmem>>, vector<1x8x128xbf16>
    %11 = vector.shape_cast %10 : vector<1x8x128xbf16> to vector<8x128xbf16>
    %cst_10 = arith.constant dense<0.000000e+00> : vector<256x128xf32>
    %12 = tpu.matmul %9, %11, %cst_10 {dimension_numbers = #tpu.dot_dimension_numbers<[0], [0], [1], [1], [0, 1, 1, 1], [], []>} : vector<8x256xbf16>, vector<8x128xbf16>, vector<256x128xf32> -> vector<256x128xf32>
    %c0_11 = arith.constant 0 : index
    %c0_12 = arith.constant 0 : index
    %13 = vector.load %arg7[%c0_11, %c0_12] : memref<1x128xf32, #tpu.memory_space<vmem>>, vector<1x128xf32>
    %14 = vector.broadcast %13 : vector<1x128xf32> to vector<256x128xf32>
    %15 = arith.addf %12, %14 : vector<256x128xf32>
    %cst_13 = arith.constant dense<0xFF800000> : vector<256xf32>
    %16 = vector.multi_reduction <maximumf>, %15, %cst_13 [1] : vector<256x128xf32> to vector<256xf32>
    %17 = vector.shape_cast %16 : vector<256xf32> to vector<256x1xf32>
    %18 = vector.broadcast %17 : vector<256x1xf32> to vector<256x128xf32>
    %19 = arith.subf %15, %18 : vector<256x128xf32>
    %20 = math.exp %19 : vector<256x128xf32>
    %cst_14 = arith.constant dense<0.000000e+00> : vector<256xf32>
    %21 = vector.multi_reduction <add>, %20, %cst_14 [1] : vector<256x128xf32> to vector<256xf32>
    %22 = vector.shape_cast %21 : vector<256xf32> to vector<256x1xf32>
    %23 = tpu.reciprocal %22 {approx = true} : vector<256x1xf32> -> vector<256x1xf32>
    %24 = vector.broadcast %23 : vector<256x1xf32> to vector<256x128xf32>
    %25 = arith.mulf %20, %24 : vector<256x128xf32>
    %26 = arith.truncf %25 : vector<256x128xf32> to vector<256x128xbf16>
    %c0_15 = arith.constant 0 : index
    %c0_16 = arith.constant 0 : index
    %c0_17 = arith.constant 0 : index
    %27 = vector.load %arg4[%c0_15, %c0_16, %c0_17] : memref<1x8x128xbf16, #tpu.memory_space<vmem>>, vector<1x8x128xbf16>
    %28 = vector.shape_cast %27 : vector<1x8x128xbf16> to vector<8x128xbf16>
    %cst_18 = arith.constant dense<0.000000e+00> : vector<256x8xf32>
    %29 = tpu.matmul %26, %28, %cst_18 {dimension_numbers = #tpu.dot_dimension_numbers<[1], [1], [0], [0], [0, 0, 1, 0], [], []>} : vector<256x128xbf16>, vector<8x128xbf16>, vector<256x8xf32> -> vector<256x8xf32>
    %c0_19 = arith.constant 0 : index
    %c0_20 = arith.constant 0 : index
    %30 = vector.load %arg8[%c0_19, %c0_20] : memref<8x8xbf16, #tpu.memory_space<vmem>>, vector<8x8xbf16>
    %31 = arith.truncf %29 : vector<256x8xf32> to vector<256x8xbf16>
    %cst_21 = arith.constant dense<0.000000e+00> : vector<8x256xf32>
    %32 = tpu.matmul %30, %31, %cst_21 {dimension_numbers = #tpu.dot_dimension_numbers<[1], [1], [0], [0], [0, 0, 1, 0], [], []>} : vector<8x8xbf16>, vector<256x8xbf16>, vector<8x256xf32> -> vector<8x256xf32>
    %c0_22 = arith.constant 0 : index
    %c0_23 = arith.constant 0 : index
    %33 = vector.load %arg9[%c0_22, %c0_23] : memref<8x8xbf16, #tpu.memory_space<vmem>>, vector<8x8xbf16>
    %cst_24 = arith.constant dense<0.000000e+00> : vector<8x256xf32>
    %34 = tpu.matmul %33, %1, %cst_24 {dimension_numbers = #tpu.dot_dimension_numbers<[1], [0], [0], [1], [0, 0, 1, 1], [], []>} : vector<8x8xbf16>, vector<8x256xbf16>, vector<8x256xf32> -> vector<8x256xf32>
    %35 = arith.addf %32, %34 : vector<8x256xf32>
    %c0_25 = arith.constant 0 : index
    %c0_26 = arith.constant 0 : index
    %36 = vector.load %arg10[%c0_25, %c0_26] : memref<8x1xf32, #tpu.memory_space<vmem>>, vector<8x1xf32>
    %37 = vector.broadcast %36 : vector<8x1xf32> to vector<8x256xf32>
    %38 = arith.addf %35, %37 : vector<8x256xf32>
    %c0_27 = arith.constant 0 : index
    %c0_28 = arith.constant 0 : index
    %c0_29 = arith.constant 0 : index
    %39 = vector.load %arg11[%c0_27, %c0_28, %c0_29] : memref<1x8x256xf32, #tpu.memory_space<vmem>>, vector<1x8x256xf32>
    %40 = vector.shape_cast %39 : vector<1x8x256xf32> to vector<8x256xf32>
    %41 = vector.shape_cast %38 : vector<8x256xf32> to vector<1x8x256xf32>
    tpu.vector_store %arg11[%c0_27, %c0_28, %c0_29], %41 {strides = array<i32>} : memref<1x8x256xf32, #tpu.memory_space<vmem>>, vector<1x8x256xf32>,
    return
  }
  func.func @transform_0(%arg0: i32, %arg1: i32) -> (i32, i32, i32) {
    %c0_i32 = arith.constant 0 : i32
    %c0_i32_0 = arith.constant 0 : i32
    return %arg0, %c0_i32, %arg1 : i32, i32, i32
  }
  func.func @transform_1(%arg0: i32, %arg1: i32) -> (i32, i32, i32) {
    %c0_i32 = arith.constant 0 : i32
    %c0_i32_0 = arith.constant 0 : i32
    %c0_i32_1 = arith.constant 0 : i32
    return %arg0, %c0_i32, %c0_i32_0 : i32, i32, i32
  }
  func.func @transform_2(%arg0: i32, %arg1: i32) -> (i32, i32, i32) {
    %c0_i32 = arith.constant 0 : i32
    %c0_i32_0 = arith.constant 0 : i32
    %c0_i32_1 = arith.constant 0 : i32
    return %arg0, %c0_i32, %c0_i32_0 : i32, i32, i32
  }
  func.func @transform_3(%arg0: i32, %arg1: i32) -> (i32, i32) {
    %c0_i32 = arith.constant 0 : i32
    %c0_i32_0 = arith.constant 0 : i32
    %c0_i32_1 = arith.constant 0 : i32
    return %c0_i32, %c0_i32_0 : i32, i32
  }
  func.func @transform_4(%arg0: i32, %arg1: i32) -> (i32, i32) {
    %c0_i32 = arith.constant 0 : i32
    %c0_i32_0 = arith.constant 0 : i32
    %c0_i32_1 = arith.constant 0 : i32
    return %c0_i32, %c0_i32_0 : i32, i32
  }
  func.func @transform_5(%arg0: i32, %arg1: i32) -> (i32, i32) {
    %c0_i32 = arith.constant 0 : i32
    %c0_i32_0 = arith.constant 0 : i32
    %c0_i32_1 = arith.constant 0 : i32
    return %c0_i32, %c0_i32_0 : i32, i32
  }
  func.func @transform_6(%arg0: i32, %arg1: i32) -> (i32, i32) {
    %c0_i32 = arith.constant 0 : i32
    %c0_i32_0 = arith.constant 0 : i32
    %c0_i32_1 = arith.constant 0 : i32
    return %c0_i32, %c0_i32_0 : i32, i32
  }
  func.func @transform_7(%arg0: i32, %arg1: i32) -> (i32, i32) {
    %c0_i32 = arith.constant 0 : i32
    %c0_i32_0 = arith.constant 0 : i32
    %c0_i32_1 = arith.constant 0 : i32
    return %c0_i32, %c0_i32_0 : i32, i32
  }
  func.func @transform_8(%arg0: i32, %arg1: i32) -> (i32, i32) {
    %c0_i32 = arith.constant 0 : i32
    %c0_i32_0 = arith.constant 0 : i32
    %c0_i32_1 = arith.constant 0 : i32
    return %c0_i32, %c0_i32_0 : i32, i32
  }
  func.func @transform_9(%arg0: i32, %arg1: i32) -> (i32, i32, i32) {
    %c0_i32 = arith.constant 0 : i32
    %c0_i32_0 = arith.constant 0 : i32
    return %arg0, %c0_i32, %arg1 : i32, i32, i32
  }
}

</mosaic_0001>

<bundles_post_ra>
// kernel: afnb_forward.2
= control target key start
LH: loop header
LB: loop body
LE: loop exit
PB: predicated region body
PF: predicated region fallthrough
CT: control target
= control target key end

     0   :  { %s1875_s0 = inlined_call_operand.hbm [shape: bf16[2,8,256], index: 0, kind: input, shape index: {}]   ;;  %s1876_s1 = inlined_call_operand.hbm [shape: bf16[8,8], index: 1, kind: input, shape index: {}]   ;;  %s1877_s2 = inlined_call_operand.hbm [shape: f32[8,1], index: 2, kind: input, shape index: {}]   ;;  %s1878_s3 = inlined_call_operand.hbm [shape: bf16[8,8], index: 3, kind: input, shape index: {}]   ;;  %s1879_s4 = inlined_call_operand.hbm [shape: f32[8,1], index: 4, kind: input, shape index: {}]   ;;  %s1880_s5 = inlined_call_operand.hbm [shape: bf16[256,128], index: 5, kind: input, shape index: {}]   ;;  %s1881_s6 = inlined_call_operand.hbm [shape: bf16[2,8,128], index: 6, kind: output, shape index: {0}]   ;;  %s1882_s7 = inlined_call_operand.hbm [shape: bf16[2,8,128], index: 7, kind: output, shape index: {1}]  }
   0x1   :  { %1888 = sst [smem:[#allocation24_spill]] %s1876_s1 }
   0x2   :  { %1889 = sst [smem:[#allocation25_spill]] %s1877_s2 }
   0x3   :  { %13 = vsyncpa [#allocation5], 0 }
   0x4   :  { %15 = vsyncpa [#allocation5 + $0x1], 0 }
   0x5   :  { %16 = vsyncpa [#allocation8], 0 }
   0x6   :  { %17 = vsyncpa [#allocation11], 0 }
   0x7   :  { %18 = vsyncpa [#allocation14], 0 }
   0x8   :  { %19 = vsyncpa [#allocation6], 0 }
   0x9   :  { %21 = vsyncpa [#allocation6 + $0x1], 0 }
   0xa   :  { %22 = vsyncpa [#allocation17], 0 }
   0xb   :  { %24 = vsyncpa [#allocation17 + $0x1], 0  ;;  %s1527_s24 = smov 0   ;;  %s1529_s25 = smov 0  }
   0xc   :  { %s1531_s26 = smov 0   ;;  %s1533_s27 = smov 0  }
   0xd   :  { %s1535_s28 = smov 0   ;;  %s1537_s29 = smov 0  }
   0xe LB: > { %s1886_s30 = sadd.s32 4294967295, %s1474_s29   ;;  %p946_p0 = scmp.ge.s32.totalorder %s1474_s29, 1  ;;  %s1474_s29 = sphi %s1537_s29, %s30_s29   ;;  %s1470_s28 = sphi %s1535_s28, %s1912_s28   ;;  %s1466_s27 = sphi %s1533_s27, %s1911_s27   ;;  %s1462_s26 = sphi %s1531_s26, %s1910_s26   ;;  %s1458_s25 = sphi %s1529_s25, %s1909_s25   ;;  %s1454_s24 = sphi %s1527_s24, %s1908_s24  }
   0xf   : > { %p1561_p1 = scmp.eq.s32.totalorder %s1886_s30, 0  ;;  %p237_p2 = scmp.lt.s32.totalorder %s1474_s29, 3 }
  0x10   : > { %s1476_s10 = smov [#allocation7]   ;;  %s1477_s12 = smov [#allocation10]  }
  0x11   : > { %s1890_s8 = scalar_select %p1561_p1, 1, 0 }
  0x12   : > { %p1566_p3 = pnand %p946_p0, %p237_p2  ;;  %s250_s11 = sshll.u32 %s1476_s10, 4  ;;  %s251_s11 = int_to_ptr.vmem [resolvable:$true] %s250_s11 }
  0x13   : > { %s272_s13 = sshll.u32 %s1477_s12, 4  ;;  %s1478_s15 = smov [#allocation9]   ;;  %s1579_s13 = int_to_ptr.vmem [resolvable:$true] %s272_s13 }
  0x14   : > { %s1891_s9 = scalar_select %p1566_p3, 1, 0 }
  0x15   : > { %p1064_p5 = pneg %p1566_p3  ;;  %s261_s16 = sshll.u32 %s1478_s15, 4  ;;  %s1581_s16 = int_to_ptr.vmem [resolvable:$true] %s261_s16 }
  0x16   : > { %s1893_s1 = sld [smem:[#allocation24_spill]] }
  0x17   : > { %p1575_p6 = pnand %p1064_p5, %p1561_p1 }
  0x19   : > { %p1591_p8 = pneg %p1575_p6 }
  0x1c   : > { %s1178_s19 = scalar_lea.hbm %s1893_s1, 64 }
  0x1d   : > { %p1179_p7 = scmp.ne.s32.totalorder %s1893_s1, %s1178_s19  ;;  %p1185_p11 = scmp.lt.u32.totalorder %s1178_s19, %s1893_s1 }
  0x1f   : > { %p1181_p9 = pnand %p1591_p8, %p1179_p7 }
  0x21   : > { %p1182_p10 = pneg %p1181_p9 }
  0x23   : > { %p1187_p12 = pnand %p1185_p11, %p1182_p10 }
  0x25   : > { %1190 = shalt.err (!%p1187_p12)
}
  0x26   : > { %s1191_s12 = scalar_lea.vmem %s251_s11, 64  ;;  %p1199_p5 = scmp.lt.s32.totalorder %s251_s11, %s251_s11 }
  0x27   : > { %p1192_p13 = scmp.ne.s32.totalorder %s251_s11, %s1191_s12  ;;  %p1200_p4 = scmp.lt.s32.totalorder %s1191_s12, %s1191_s12 }
  0x29   : > { %p1194_p0 = pnand %p1192_p13, %p1591_p8  ;;  %p1201_p3 = por %p1200_p4, %p1199_p5 }
  0x2b   : > { %p1195_p2 = pneg %p1194_p0 }
  0x2d   : > { %p1202_p1 = pnand %p1201_p3, %p1195_p2 }
  0x2f   : > { %1205 = shalt.err (!%p1202_p1)
}
  0x30   : > { %1067 = dma.hbm_to_vmem [thread:$0]  (!%p1575_p6), %s1893_s1, 64, %s251_s11, [#allocation8]  }
  0x31   : > { %s1206_s20 = scalar_lea.hbm %s1878_s3, 64 }
  0x32   : > { %p1207_p7 = scmp.ne.s32.totalorder %s1878_s3, %s1206_s20  ;;  %p1213_p1 = scmp.lt.u32.totalorder %s1206_s20, %s1878_s3 }
  0x34   : > { %p1209_p9 = pnand %p1207_p7, %p1591_p8 }
  0x36   : > { %p1210_p4 = pneg %p1209_p9 }
  0x38   : > { %p1215_p3 = pnand %p1213_p1, %p1210_p4 }
  0x3a   : > { %1218 = shalt.err (!%p1215_p3)
}
  0x3b   : > { %s1219_s11 = scalar_lea.vmem %s1579_s13, 64  ;;  %p1227_p13 = scmp.lt.s32.totalorder %s1579_s13, %s1579_s13 }
  0x3c   : > { %p1220_p10 = scmp.ne.s32.totalorder %s1579_s13, %s1219_s11  ;;  %p1228_p0 = scmp.lt.s32.totalorder %s1219_s11, %s1219_s11 }
  0x3e   : > { %p1222_p11 = pnand %p1220_p10, %p1591_p8  ;;  %p1229_p2 = por %p1228_p0, %p1227_p13 }
  0x40   : > { %p1223_p12 = pneg %p1222_p11 }
  0x42   : > { %p1230_p5 = pnand %p1229_p2, %p1223_p12 }
  0x44   : > { %1233 = shalt.err (!%p1230_p5)
}
  0x45   : > { %1073 = dma.hbm_to_vmem [thread:$0]  (!%p1575_p6), %s1878_s3, 64, %s1579_s13, [#allocation11]  }
  0x46   : > { %s1895_s2 = sld [smem:[#allocation25_spill]] }
  0x4c   : > { %s1234_s20 = scalar_lea.hbm %s1895_s2, 128 }
  0x4d   : > { %p1235_p7 = scmp.ne.s32.totalorder %s1895_s2, %s1234_s20  ;;  %p1241_p1 = scmp.lt.u32.totalorder %s1234_s20, %s1895_s2 }
  0x4f   : > { %p1237_p9 = pnand %p1235_p7, %p1591_p8 }
  0x51   : > { %p1238_p4 = pneg %p1237_p9 }
  0x53   : > { %p1243_p3 = pnand %p1241_p1, %p1238_p4 }
  0x55   : > { %1246 = shalt.err (!%p1243_p3)
}
  0x56   : > { %s1247_s13 = scalar_lea.vmem %s1581_s16, 128  ;;  %p1255_p13 = scmp.lt.s32.totalorder %s1581_s16, %s1581_s16 }
  0x57   : > { %p1248_p10 = scmp.ne.s32.totalorder %s1581_s16, %s1247_s13  ;;  %p1256_p0 = scmp.lt.s32.totalorder %s1247_s13, %s1247_s13 }
  0x59   : > { %p1250_p11 = pnand %p1248_p10, %p1591_p8  ;;  %p1257_p2 = por %p1256_p0, %p1255_p13 }
  0x5b   : > { %p1251_p12 = pneg %p1250_p11 }
  0x5d   : > { %p1258_p5 = pnand %p1257_p2, %p1251_p12 }
  0x5f   : > { %1261 = shalt.err (!%p1258_p5)
}
  0x60   : > { %1070 = dma.hbm_to_vmem [thread:$0]  (!%p1575_p6), %s1895_s2, 128, %s1581_s16, [#allocation8]  }
  0x61   : > { %s1479_s17 = smov [#allocation12]   ;;  %s1480_s19 = smov [#allocation13]  }
  0x62   : > { %s283_s18 = sshll.u32 %s1479_s17, 4  ;;  %s296_s20 = sshll.u32 %s1480_s19, 4  ;;  %s284_s18 = int_to_ptr.vmem [resolvable:$true] %s283_s18  ;;  %s297_s20 = int_to_ptr.vmem [resolvable:$true] %s296_s20 }
  0x63   : > { %s1262_s10 = scalar_lea.hbm %s1879_s4, 128 }
  0x64   : > { %p1263_p7 = scmp.ne.s32.totalorder %s1879_s4, %s1262_s10  ;;  %p1269_p1 = scmp.lt.u32.totalorder %s1262_s10, %s1879_s4 }
  0x66   : > { %p1265_p9 = pnand %p1263_p7, %p1591_p8 }
  0x68   : > { %p1266_p4 = pneg %p1265_p9 }
  0x6a   : > { %p1271_p3 = pnand %p1269_p1, %p1266_p4 }
  0x6c   : > { %1274 = shalt.err (!%p1271_p3)
}
  0x6d   : > { %s1275_s16 = scalar_lea.vmem %s284_s18, 128  ;;  %p1283_p13 = scmp.lt.s32.totalorder %s284_s18, %s284_s18 }
  0x6e   : > { %p1276_p10 = scmp.ne.s32.totalorder %s284_s18, %s1275_s16  ;;  %p1284_p0 = scmp.lt.s32.totalorder %s1275_s16, %s1275_s16 }
  0x70   : > { %p1278_p11 = pnand %p1276_p10, %p1591_p8  ;;  %p1285_p2 = por %p1284_p0, %p1283_p13 }
  0x72   : > { %p1279_p12 = pneg %p1278_p11 }
  0x74   : > { %p1286_p5 = pnand %p1285_p2, %p1279_p12 }
  0x76   : > { %1289 = shalt.err (!%p1286_p5)
}
  0x77   : > { %1076 = dma.hbm_to_vmem [thread:$0]  (!%p1575_p6), %s1879_s4, 128, %s284_s18, [#allocation11]  }
  0x78   : > { %s1290_s21 = scalar_lea.hbm %s1880_s5, 2048 }
  0x79   : > { %p1291_p7 = scmp.ne.s32.totalorder %s1880_s5, %s1290_s21  ;;  %p1297_p1 = scmp.lt.u32.totalorder %s1290_s21, %s1880_s5 }
  0x7b   : > { %p1293_p9 = pnand %p1291_p7, %p1591_p8 }
  0x7d   : > { %p1294_p4 = pneg %p1293_p9 }
  0x7f   : > { %p1299_p3 = pnand %p1297_p1, %p1294_p4 }
  0x81   : > { %1302 = shalt.err (!%p1299_p3)
}
  0x82   : > { %s1303_s11 = scalar_lea.vmem %s297_s20, 2048  ;;  %p1311_p13 = scmp.lt.s32.totalorder %s297_s20, %s297_s20 }
  0x83   : > { %p1304_p10 = scmp.ne.s32.totalorder %s297_s20, %s1303_s11  ;;  %p1312_p0 = scmp.lt.s32.totalorder %s1303_s11, %s1303_s11 }
  0x85   : > { %p1306_p11 = pnand %p1304_p10, %p1591_p8  ;;  %p1313_p2 = por %p1312_p0, %p1311_p13 }
  0x87   : > { %p1307_p12 = pneg %p1306_p11 }
  0x89   : > { %p1314_p5 = pnand %p1313_p2, %p1307_p12 }
  0x8b   : > { %1317 = shalt.err (!%p1314_p5)
}
  0x8c   : > { %s1481_s18 = smov 64   ;;  %s1482_s22 = smov 4  }
  0x8d   : > { %1079 = dma.hbm_to_vmem [thread:$0]  (!%p1575_p6), %s1880_s5, 2048, %s297_s20, [#allocation14], %s1481_s18, %s1481_s18, %s1482_s22  }
  0x8e   : > { %s945_s17 = sadd.s32 4294967294, %s1474_s29   ;;  %s42_s30 = sadd.s32 1, %s1470_s28 }
  0x8f   : > { %s51_s19 = sadd.s32 1, %s1462_s26  ;;  %p44_p8 = scmp.ge.s32.totalorder %s42_s30, 2 }
  0x90   : > { %p58_p7 = scmp.ne.s32.totalorder %s1462_s26, %s1458_s25  ;;  %p59_p9 = scmp.eq.s32.totalorder %s1474_s29, 0 }
  0x91   : > { %p64_p4 = scmp.ne.s32.totalorder %s1458_s25, %s1454_s24  ;;  %s1914_s30 = smov (%p44_p8, %s42_s30), 0 }
  0x92   : > { %p1699_p1 = por %p59_p9, %p58_p7  ;;  %p1897_p3 = scmp.ne.s32.totalorder %s1890_s8, 0 }
  0x93   : > { %s46_s21 = ssub.s32 %s1470_s28, %s1914_s30  ;;  %s1899_s23 = sadd.s32 4294967295, %s1474_s29  }
  0x94   : > { %p1705_p6 = por %p1897_p3, %p64_p4  ;;  %p198_p10 = scmp.eq.s32.totalorder %s1899_s23, 1 }
  0x95   : > { %p49_p11 = scmp.eq.s32.totalorder %s46_s21, 0  ;;  %p204_p12 = scmp.eq.s32.totalorder %s945_s17, 1 }
  0x96   : > { %p1713_p13 = por %p198_p10, %p58_p7  ;;  %p1096_p0 = scmp.lt.s32.totalorder %s1474_s29, 2 }
  0x97   : > { %s1719_s12 = scalar_select %p49_p11, %s1462_s26, %s51_s19  }
  0x98   : > { %s1900_s10 = scalar_select %p1713_p13, 1, 0 }
  0x99   : > { %p1721_p2 = por %p204_p12, %p64_p4  ;;  %s310_s11 = sand.u32 1, %s1462_s26  }
  0x9a   : > { %s953_s18 = sshll.u32 %s310_s11, 3  ;;  %s993_s22 = sshll.u32 %s1470_s28, 7 }
  0x9b   : > { %s1901_s13 = scalar_select %p1721_p2, 1, 0 }
  0x9c   : > { %s1730_s23 = scalar_lea.hbm %s1875_s0, %s993_s22  ;;  %s314_s17 = scalar_lea.vmem [#allocation4], %s953_s18 }
  0x9d   : > { %s324_s21 = sshll.u32 %s314_s17, 4  ;;  %p1736_p5 = pnand %p1096_p0, %p1699_p1  ;;  %s1732_s21 = int_to_ptr.vmem [resolvable:$true] %s324_s21 }
  0x9e   : > { %s311_s1 = scalar_lea.sflag [#allocation5], %s310_s11  ;;  %s1318_s2 = scalar_lea.hbm %s1730_s23, 128 }
  0x9f   : > { %p1319_p8 = scmp.ne.s32.totalorder %s1730_s23, %s1318_s2  ;;  %p1320_p7 = pneg %p1736_p5 }
  0xa0   : > { %s1323_s16 = scalar_lea.hbm %s1875_s0, 256  ;;  %p1324_p1 = scmp.lt.u32.totalorder %s1730_s23, %s1875_s0 }
  0xa1   : > { %p1321_p9 = pnand %p1320_p7, %p1319_p8  ;;  %p1325_p3 = scmp.lt.u32.totalorder %s1323_s16, %s1318_s2 }
  0xa2   : > { %p1327_p11 = scmp.lt.u32.totalorder %s1318_s2, %s1730_s23 }
  0xa3   : > { %p1322_p4 = pneg %p1321_p9  ;;  %p1326_p10 = por %p1325_p3, %p1324_p1 }
  0xa5   : > { %p1328_p12 = por %p1327_p11, %p1326_p10 }
  0xa7   : > { %p1329_p0 = pnand %p1328_p12, %p1322_p4 }
  0xa9   : > { %1332 = shalt.err (!%p1329_p0)
}
  0xaa   : > { %s1333_s11 = scalar_lea.vmem %s1732_s21, 128  ;;  %s1483_s17 = smov [#allocation4]  }
  0xab   : > { %p1334_p8 = scmp.ne.s32.totalorder %s1732_s21, %s1333_s11  ;;  %s1338_s18 = sshll.u32 %s1483_s17, 4  ;;  %s1339_s18 = int_to_ptr.vmem [resolvable:$false] %s1338_s18 }
  0xac   : > { %s1340_s22 = scalar_lea.vmem %s1339_s18, 256  ;;  %p1341_p13 = scmp.lt.s32.totalorder %s1732_s21, %s1339_s18 }
  0xad   : > { %p1336_p9 = pnand %p1334_p8, %p1320_p7  ;;  %p1342_p1 = scmp.lt.s32.totalorder %s1340_s22, %s1333_s11 }
  0xaf   : > { %p1337_p2 = pneg %p1336_p9  ;;  %p1343_p3 = por %p1342_p1, %p1341_p13 }
  0xb1   : > { %p1344_p10 = pnand %p1343_p3, %p1337_p2 }
  0xb3   : > { %1347 = shalt.err (!%p1344_p10)
}
  0xb4   : > { %1083 = dma.hbm_to_vmem [thread:$0]  (!%p1736_p5), %s1730_s23, 128, %s1732_s21, %s311_s1  }
  0xb5   : > { %p1903_p4 = scmp.ne.s32.totalorder %s1891_s9, 0 }
  0xb6   : > { %s1768_s2 = sand.u32 (!%p1903_p4), 1, %s1458_s25  }
  0xb7   : > { %333 = sbr.rel (%p1903_p4) target bundleno = 678 (0x2a6), region = 44  ;;  %s957_s16 = sshll.u32 (!%p1903_p4), %s1768_s2, 3 }
  0xb8   : > { %s336_s14 = scalar_lea.sflag (!%p1903_p4), [#allocation5], %s1768_s2  ;;  %s339_s15 = scalar_lea.vmem (!%p1903_p4), [#allocation4], %s957_s16 }
  0xbe   : > { %1429 = dma.done.wait (%p1705_p6), %s336_s14, 128  }
  0xbf   : > { %1431 = vsyncadd (%p1705_p6), %s336_s14, 4294967168  ;;  %p1904_p13 = scmp.ne.s32.totalorder %s1890_s8, 0 }
  0xc1   : > { %1433 = dma.done.wait (%p1904_p13), [#allocation8], 192  }
  0xc2   : > { %1435 = vsyncadd (%p1904_p13), [#allocation8], 4294967104 }
  0xc3   : > { %1437 = dma.done.wait (%p1904_p13), [#allocation11], 192  }
  0xc4   : > { %1439 = vsyncadd (%p1904_p13), [#allocation11], 4294967104 }
  0xc5   : > { %1441 = dma.done.wait (%p1904_p13), [#allocation14], 2048  }
  0xc6   : > { %1443 = vsyncadd (%p1904_p13), [#allocation14], 4294965248  ;;  %v1484_v0 = vmov 0   ;;  %v404_v1 = vld [vmem:[%s339_s15] sm:$0xff]  ;;  %vm453_vm0 = vcmask 1043456   ;;  %v438_v4 = vld [vmem:[#allocation9] sm:$0xff] }
  0xc7   : > { %492 = vmatprep.mubr.bf16.mxu0 %v1484_v0  ;;  %545 = vmatprep.mubr.bf16.mxu1 %v1484_v0  ;;  %v966_v2 = vcombine.high %v404_v1, %v404_v1  ;;  %v965_v3 = vcombine.low %v404_v1, %v404_v1  ;;  %v437_v5 = vld [vmem:[#allocation7] sm:$0xf]  ;;  %v503_v6 = vld [vmem:[#allocation10] sm:$0xf]  ;;  %v1162_v7 = vld [vmem:[#allocation13 + $0x40] sm:$0xff]   ;;  %vm449_vm1 = vcmask 64512  }
  0xc8   : > { %1159 = vset.pattern.permute.xlu0 %v1484_v0  ;;  %v504_v9 = vld [vmem:[#allocation12] sm:$0xff]  ;;  %v1163_v10 = vld [vmem:[#allocation13] sm:$0xff]   ;;  %v1164_v11 = vld [vmem:[#allocation13 + $0x48] sm:$0xff]   ;;  %s963_s1 = sshll.u32 %s1768_s2, 2  ;;  %s989_s8 = sshll.u32 %s1466_s27, 6 }
  0xc9   : > { %441 = vperm.xlu0 %1159, %v438_v4   ;;  %967 = vmatprep.subr.msk.bf16.mxu0 %vm453_vm0, %v966_v2  ;;  %v455_v8 = vsel %vm453_vm0, %v965_v3, 0  ;;  %v1165_v12 = vld [vmem:[#allocation13 + $0x8] sm:$0xff]   ;;  %v1166_v13 = vld [vmem:[#allocation13 + $0x50] sm:$0xff]   ;;  %v1168_v15 = vld [vmem:[#allocation13 + $0x58] sm:$0xff]   ;;  %s394_s9 = scalar_lea.vmem [#allocation16], %s963_s1  ;;  %s1790_s23 = scalar_lea.vmem [#allocation15], %s963_s1 }
  0xca   : > { %969 = vmatprep.subr.msk.bf16.mxu1 %vm453_vm0, %v966_v2  ;;  %461 = vmatpush1.bf16.msra.mxu0 %v455_v8  ;;  %v1167_v14 = vld [vmem:[#allocation13 + $0x10] sm:$0xff]   ;;  %v1169_v16 = vld [vmem:[#allocation13 + $0x18] sm:$0xff]   ;;  %v1170_v17 = vld [vmem:[#allocation13 + $0x60] sm:$0xff]   ;;  %s781_s20 = sshll.u32 %s394_s9, 4  ;;  %s768_s21 = sshll.u32 %s1790_s23, 4  ;;  %s1798_s20 = int_to_ptr.vmem [resolvable:$true] %s781_s20  ;;  %s1805_s21 = int_to_ptr.vmem [resolvable:$true] %s768_s21 }
  0xcb   : > { %514 = vmatpush1.bf16.msra.mxu1 %v455_v8  ;;  %994 = vmatprep.subr.bf16.mxu0 %v1162_v7  ;;  %v1171_v18 = vld [vmem:[#allocation13 + $0x20] sm:$0xff]   ;;  %v1172_v19 = vld [vmem:[#allocation13 + $0x68] sm:$0xff]   ;;  %v1174_v21 = vld [vmem:[#allocation13 + $0x70] sm:$0xff]   ;;  %s1796_s27 = scalar_lea.hbm %s1882_s7, %s989_s8  ;;  %s1803_s22 = scalar_lea.hbm %s1881_s6, %s989_s8 }
  0xcc   : > { %1016 = vmatprep.subr.bf16.mxu1 %v1162_v7  ;;  %v1173_v20 = vld [vmem:[#allocation13 + $0x28] sm:$0xff]   ;;  %v1175_v22 = vld [vmem:[#allocation13 + $0x30] sm:$0xff]   ;;  %v1176_v23 = vld [vmem:[#allocation13 + $0x78] sm:$0xff]   ;;  %s755_s16 = scalar_lea.sflag [#allocation17], %s1768_s2  ;;  %s1348_s14 = scalar_lea.vmem %s1798_s20, 64 }
  0xcd   : > { %507 = vperm.xlu0 %1159, %v504_v9   ;;  %968 = vmatmul.mubr.msk.bf16.vlgmr.msra.gmra.mrb[0].mxu0 %vm449_vm1, %v437_v5  ;;  %v1177_v24 = vld [vmem:[#allocation13 + $0x38] sm:$0xff]   ;;  %p1349_p6 = scmp.ne.s32.totalorder %s1798_s20, %s1348_s14  ;;  %p1905_p2 = scmp.ne.s32.totalorder %s1900_s10, 0 }
  0xce   : > { %970 = vmatmul.mubr.msk.bf16.vlgmr.msra.gmra.mrb[0].mxu1 %vm449_vm1, %v503_v6  ;;  %995 = vmatpush3.bf16.msra.mxu0 %v1163_v10  ;;  %s1485_s15 = smov [#allocation16]  }
  0xcf   : > { %1017 = vmatpush3.bf16.msra.mxu1 %v1163_v10  ;;  %996 = vmatprep.subr.bf16.mxu0 %v1164_v11  ;;  %p1350_p5 = pnand %p1349_p6, %p1905_p2  ;;  %s1352_s1 = sshll.u32 %s1485_s15, 4  ;;  %s1353_s1 = int_to_ptr.vmem [resolvable:$false] %s1352_s1 }
  0xd0   : > { %1018 = vmatprep.subr.bf16.mxu1 %v1164_v11  ;;  %s1354_s19 = scalar_lea.vmem %s1353_s1, 128  ;;  %p1355_p11 = scmp.lt.s32.totalorder %s1798_s20, %s1353_s1 }
  0xd1   : > { %p1351_p7 = pneg %p1350_p5  ;;  %p1356_p12 = scmp.lt.s32.totalorder %s1354_s19, %s1348_s14 }
  0xd2   : > { %997 = vmatpush3.bf16.msra.mxu0 %v1165_v12 }
  0xd3   : > { %1019 = vmatpush3.bf16.msra.mxu1 %v1165_v12  ;;  %998 = vmatprep.subr.bf16.mxu0 %v1166_v13  ;;  %p1357_p0 = por %p1356_p12, %p1355_p11 }
  0xd4   : > { %1020 = vmatprep.subr.bf16.mxu1 %v1166_v13 }
  0xd5   : > { %p1358_p8 = pnand %p1357_p0, %p1351_p7 }
  0xd6   : > { %999 = vmatpush3.bf16.msra.mxu0 %v1167_v14 }
  0xd7   : > { %1021 = vmatpush3.bf16.msra.mxu1 %v1167_v14  ;;  %1000 = vmatprep.subr.bf16.mxu0 %v1168_v15 }
  0xd8   : > { %1022 = vmatprep.subr.bf16.mxu1 %v1168_v15 }
  0xda   : > { %1001 = vmatpush3.bf16.msra.mxu0 %v1169_v16 }
  0xdb   : > { %1023 = vmatpush3.bf16.msra.mxu1 %v1169_v16  ;;  %1002 = vmatprep.subr.bf16.mxu0 %v1170_v17 }
  0xdc   : > { %1024 = vmatprep.subr.bf16.mxu1 %v1170_v17 }
  0xde   : > { %1003 = vmatpush3.bf16.msra.mxu0 %v1171_v18 }
  0xdf   : > { %1025 = vmatpush3.bf16.msra.mxu1 %v1171_v18  ;;  %1004 = vmatprep.subr.bf16.mxu0 %v1172_v19 }
  0xe0   : > { %1026 = vmatprep.subr.bf16.mxu1 %v1172_v19 }
  0xe2   : > { %1005 = vmatpush3.bf16.msra.mxu0 %v1173_v20 }
  0xe3   : > { %1027 = vmatpush3.bf16.msra.mxu1 %v1173_v20  ;;  %1006 = vmatprep.subr.bf16.mxu0 %v1174_v21 }
  0xe4   : > { %1028 = vmatprep.subr.bf16.mxu1 %v1174_v21 }
  0xe6   : > { %1007 = vmatpush3.bf16.msra.mxu0 %v1175_v22 }
  0xe7   : > { %1029 = vmatpush3.bf16.msra.mxu1 %v1175_v22  ;;  %1008 = vmatprep.subr.bf16.mxu0 %v1176_v23 }
  0xe8   : > { %1030 = vmatprep.subr.bf16.mxu1 %v1176_v23 }
  0xea   : > { %1009 = vmatpush3.bf16.msra.mxu0 %v1177_v24 }
  0xeb   : > { %1031 = vmatpush3.bf16.msra.mxu1 %v1177_v24 }
 0x148   : > { %v442_v25 = vpop.permute.xlu0 %441 }
 0x14c   : > { %v508_v26 = vpop.permute.xlu0 %507 }
 0x1a0   : > { %v494_v27 = vpop.f32.mrb[0].mxu0 }
 0x1a1   : > { %v547_v28 = vpop.f32.mrb[0].mxu1  ;;  %v495_v29 = vadd.f32 %v494_v27, %v442_v25  ;;  %v496_v31 = vpop.f32.mrb[1].mxu0 }
 0x1a2   : > { %v548_v30 = vadd.f32 %v547_v28, %v508_v26  ;;  %v549_v32 = vpop.f32.mrb[1].mxu1  ;;  %v497_v33 = vadd.f32 %v496_v31, %v442_v25  ;;  %v498_v35 = vpop.f32.mrb[2].mxu0 }
 0x1a3   : > { %v550_v34 = vadd.f32 %v549_v32, %v508_v26  ;;  %v551_v36 = vpop.f32.mrb[2].mxu1  ;;  %v501_v37 = vmax.f32 %v495_v29, 0.0  ;;  %v499_v38 = vpop.f32.mrb[3].mxu0 }
 0x1a4   : > { %v552_v39 = vpop.f32.mrb[3].mxu1  ;;  %v502_v40 = vmax.f32 %v497_v33, 0.0  ;;  %v696_v42 = vpack.c.bf16 %v548_v30, %v548_v30 }
 0x1a5   : > { %v697_v41 = vpack.c.bf16 %v550_v34, %v550_v34  ;;  %v555_v44 = vpack.c.bf16 %v501_v37, %v501_v37 }
 0x1a6   : > { %v556_v43 = vpack.c.bf16 %v502_v40, %v502_v40 }
 0x1a7   : > { %730 = vmatprep.mubr.bf16.mxu1 %v697_v41 }
 0x1a8   : > { %731 = vmatmul.mubr.bf16.vlgmr.msra.gmra.mrb[4].mxu1 %v696_v42  ;;  %685 = vmatprep.mubr.bf16.mxu0 %v556_v43 }
 0x1a9   : > { %686 = vmatmul.mubr.bf16.vlgmr.msra.gmra.mrb[4].mxu0 %v555_v44 }
 0x27b   : > { %v1032_v45 = vpop.f32.mrb[4].mxu1 }
 0x27c   : > { %v1033_v46 = vpop.f32.mrb[5].mxu1  ;;  %v1010_v48 = vpop.f32.mrb[4].mxu0 }
 0x27d   : > { %v1034_v47 = vadd.f32 %v1033_v46, %v1032_v45  ;;  %v1035_v49 = vpop.f32.mrb[6].mxu1  ;;  %v1011_v50 = vpop.f32.mrb[5].mxu0 }
 0x27e   : > { %v1036_v51 = vpop.f32.mrb[7].mxu1  ;;  %v1012_v53 = vadd.f32 %v1011_v50, %v1010_v48  ;;  %v1013_v54 = vpop.f32.mrb[6].mxu0 }
 0x27f   : > { %v747_v52 = vpack.c.bf16 %v1034_v47, %v1034_v47  ;;  %v1014_v55 = vpop.f32.mrb[7].mxu0 }
 0x280   : > { %v744_v56 = vpack.c.bf16 %v1012_v53, %v1012_v53 }
 0x281   : > { %748 = vst [vmem:[%s394_s9] sm:$0xf] %v747_v52 }
 0x282   : > { %1361 = shalt.err (!%p1358_p8)
}
 0x283   : > { %s1362_s8 = scalar_lea.hbm %s1796_s27, 64  ;;  %s1366_s17 = scalar_lea.hbm %s1882_s7, 128 }
 0x284   : > { %p1363_p9 = scmp.ne.s32.totalorder %s1796_s27, %s1362_s8  ;;  %p1367_p10 = scmp.lt.u32.totalorder %s1796_s27, %s1882_s7 }
 0x285   : > { %p1368_p4 = scmp.lt.u32.totalorder %s1366_s17, %s1362_s8  ;;  %p1370_p6 = scmp.lt.u32.totalorder %s1362_s8, %s1796_s27 }
 0x286   : > { %p1364_p1 = pnand %p1363_p9, %p1905_p2 }
 0x287   : > { %p1369_p13 = por %p1368_p4, %p1367_p10 }
 0x288   : > { %p1365_p3 = pneg %p1364_p1 }
 0x289   : > { %p1371_p5 = por %p1370_p6, %p1369_p13 }
 0x28b   : > { %p1372_p7 = pnand %p1371_p5, %p1365_p3 }
 0x28d   : > { %1375 = shalt.err (!%p1372_p7)
}
 0x28e   : > { %1061 = dma.vmem_to_hbm [thread:$0]  (%p1905_p2), %s1798_s20, 64, %s1796_s27, %s755_s16   ;;  %745 = vst [vmem:[%s1790_s23] sm:$0xf] %v744_v56 }
 0x28f   : > { %s750_s14 = scalar_lea.sflag [#allocation6], %s1768_s2  ;;  %s1376_s1 = scalar_lea.vmem %s1805_s21, 64 }
 0x290   : > { %p1377_p11 = scmp.ne.s32.totalorder %s1805_s21, %s1376_s1  ;;  %s1486_s19 = smov [#allocation15]  }
 0x291   : > { %s1380_s8 = sshll.u32 %s1486_s19, 4  ;;  %s1381_s8 = int_to_ptr.vmem [resolvable:$false] %s1380_s8 }
 0x292   : > { %p1378_p12 = pnand %p1377_p11, %p1905_p2  ;;  %s1382_s9 = scalar_lea.vmem %s1381_s8, 128 }
 0x293   : > { %p1383_p8 = scmp.lt.s32.totalorder %s1805_s21, %s1381_s8  ;;  %p1384_p9 = scmp.lt.s32.totalorder %s1382_s9, %s1376_s1 }
 0x294   : > { %p1379_p0 = pneg %p1378_p12 }
 0x295   : > { %p1385_p1 = por %p1384_p9, %p1383_p8 }
 0x297   : > { %p1386_p3 = pnand %p1385_p1, %p1379_p0 }
 0x299   : > { %1389 = shalt.err (!%p1386_p3)
}
 0x29a   : > { %s1390_s2 = scalar_lea.hbm %s1803_s22, 64  ;;  %s1394_s27 = scalar_lea.hbm %s1881_s6, 128 }
 0x29b   : > { %p1391_p10 = scmp.ne.s32.totalorder %s1803_s22, %s1390_s2  ;;  %p1395_p6 = scmp.lt.u32.totalorder %s1803_s22, %s1881_s6 }
 0x29c   : > { %p1396_p5 = scmp.lt.u32.totalorder %s1394_s27, %s1390_s2  ;;  %p1398_p11 = scmp.lt.u32.totalorder %s1390_s2, %s1803_s22 }
 0x29d   : > { %p1392_p4 = pnand %p1391_p10, %p1905_p2 }
 0x29e   : > { %p1397_p7 = por %p1396_p5, %p1395_p6 }
 0x29f   : > { %p1393_p13 = pneg %p1392_p4 }
 0x2a0   : > { %p1399_p12 = por %p1398_p11, %p1397_p7 }
 0x2a2   : > { %p1400_p0 = pnand %p1399_p12, %p1393_p13 }
 0x2a4   : > { %1403 = shalt.err (!%p1400_p0)
}
 0x2a5   : > { %1060 = dma.vmem_to_hbm [thread:$0]  (%p1905_p2), %s1805_s21, 64, %s1803_s22, %s750_s14  }
 0x2a6 PF: > { %s793_s17 = sand.u32 1, %s1454_s24   ;;  %p1906_p8 = scmp.ne.s32.totalorder %s1901_s13, 0 }
 0x2a7   : > { %p1907_p9 = scmp.ge.s32.totalorder %s1474_s29, 2  ;;  %s794_s18 = scalar_lea.sflag [#allocation6], %s793_s17 }
 0x2a9   : > { %p1085_p1 = pnand %p1907_p9, %p1906_p8 }
 0x2ab   : > { %1445 = dma.done.wait (!%p1085_p1), %s794_s18, 64  }
 0x2ac   : > { %1447 = vsyncadd (!%p1085_p1), %s794_s18, 4294967232  ;;  %s803_s15 = scalar_lea.sflag [#allocation17], %s793_s17 }
 0x2ad   : > { %1449 = dma.done.wait (!%p1085_p1), %s803_s15, 64  }
 0x2ae   : > { %1451 = vsyncadd (!%p1085_p1), %s803_s15, 4294967232  ;;  %s30_s29 = sadd.s32 1, %s1474_s29   ;;  %s1908_s24 = smov %s1458_s25 }
 0x2af   : > { %p27_p3 = scmp.ge.s32.totalorder %s30_s29, 4   ;;  %s1909_s25 = smov %s1462_s26 }
 0x2b0   : > { %s1910_s26 = smov %s1719_s12  ;;  %s1911_s27 = smov %s1470_s28 }
 0x2b1   : > { %s1912_s28 = smov %s1914_s30  ;;  %29 = sbr.rel (!%p27_p3) target bundleno = 14 (0xe), region = 135 }
 0x2b8   :  { %808 = vsyncpa [#allocation5], 1 }
 0x2b9   :  { %810 = vsyncpa [#allocation5 + $0x1], 1 }
 0x2ba   :  { %811 = vsyncpa [#allocation8], 1 }
 0x2bb   :  { %812 = vsyncpa [#allocation11], 1 }
 0x2bc   :  { %813 = vsyncpa [#allocation14], 1 }
 0x2bd   :  { %814 = vsyncpa [#allocation6], 1 }
 0x2be   :  { %816 = vsyncpa [#allocation6 + $0x1], 1 }
 0x2bf   :  { %817 = vsyncpa [#allocation17], 1 }
 0x2c0   :  { %819 = vsyncpa [#allocation17 + $0x1], 1 }

// kernel: afnb_forward.3
= control target key start
LH: loop header
LB: loop body
LE: loop exit
PB: predicated region body
PF: predicated region fallthrough
CT: control target
= control target key end

     0   :  { %s3278_s0 = inlined_call_operand.hbm [shape: bf16[2,8,256], index: 0, kind: input, shape index: {}]   ;;  %s3279_s1 = inlined_call_operand.hbm [shape: bf16[2,8,128], index: 1, kind: input, shape index: {}]   ;;  %s3280_s2 = inlined_call_operand.hbm [shape: bf16[2,8,128], index: 2, kind: input, shape index: {}]   ;;  %s3281_s3 = inlined_call_operand.hbm [shape: bf16[8,8], index: 3, kind: input, shape index: {}]   ;;  %s3282_s4 = inlined_call_operand.hbm [shape: f32[8,1], index: 4, kind: input, shape index: {}]   ;;  %s3283_s5 = inlined_call_operand.hbm [shape: f32[1,128], index: 5, kind: input, shape index: {}]   ;;  %s3284_s6 = inlined_call_operand.hbm [shape: bf16[8,8], index: 6, kind: input, shape index: {}]   ;;  %s3285_s7 = inlined_call_operand.hbm [shape: bf16[8,8], index: 7, kind: input, shape index: {}]   ;;  %s3286_s8 = inlined_call_operand.hbm [shape: f32[8,1], index: 8, kind: input, shape index: {}]   ;;  %s3287_s9 = inlined_call_operand.hbm [shape: f32[2,8,256], index: 9, kind: output, shape index: {}]  }
   0x1   :  { %3311 = sst [smem:[#allocation32_spill]] %s3279_s1 }
   0x2   :  { %3312 = sst [smem:[#allocation33_spill]] %s3281_s3 }
   0x3   :  { %3313 = sst [smem:[#allocation34_spill]] %s3283_s5 }
   0x4   :  { %3314 = sst [smem:[#allocation35_spill]] %s3285_s7 }
   0x5   :  { %3315 = sst [smem:[#allocation36_spill]] %s3287_s9 }
   0x6   :  { %14 = vsyncpa [#allocation3], 0 }
   0x7   :  { %16 = vsyncpa [#allocation3 + $0x1], 0 }
   0x8   :  { %17 = vsyncpa [#allocation6], 0 }
   0x9   :  { %19 = vsyncpa [#allocation6 + $0x1], 0 }
   0xa   :  { %20 = vsyncpa [#allocation9], 0 }
   0xb   :  { %21 = vsyncpa [#allocation12], 0 }
   0xc   :  { %22 = vsyncpa [#allocation15], 0 }
   0xd   :  { %23 = vsyncpa [#allocation4], 0 }
   0xe   :  { %25 = vsyncpa [#allocation4 + $0x1], 0  ;;  %s2540_s30 = smov 0   ;;  %s2542_s10 = smov 0  }
   0xf   :  { %s2544_s11 = smov 0   ;;  %s2546_s12 = smov 0  }
  0x10   :  { %s2548_s13 = smov 0   ;;  %s2550_s14 = smov 0  }
  0x11 LB: > { %3316 = sst [smem:[#allocation24_spill]] %s2457_s30  ;;  %s2571_s15 = sadd.s32 4294967295, %s2477_s14   ;;  %s2477_s14 = sphi %s2550_s14, %s31_s14   ;;  %s2473_s13 = sphi %s2548_s13, %s3368_s13   ;;  %s2469_s12 = sphi %s2546_s12, %s3367_s12   ;;  %s2465_s11 = sphi %s2544_s11, %s3363_s11   ;;  %s2461_s10 = sphi %s2542_s10, %s3366_s10   ;;  %s2457_s30 = sphi %s2540_s30, %s3365_s30  }
  0x12   : > { %3317 = sst [smem:[#allocation25_spill]] %s2465_s11  ;;  %p1670_p0 = scmp.ge.s32.totalorder %s2477_s14, 1 }
  0x13   : > { %3318 = sst [smem:[#allocation26_spill]] %s2469_s12  ;;  %p3288_p1 = scmp.eq.s32.totalorder %s2571_s15, 0 }
  0x14   : > { %3319 = sst [smem:[#allocation27_spill]] %s2477_s14  ;;  %p282_p2 = scmp.lt.s32.totalorder %s2477_s14, 3 }
  0x15   : > { %s2479_s17 = smov [#allocation8]   ;;  %s2480_s19 = smov [#allocation11]  }
  0x16   : > { %p2576_p3 = pnand %p1670_p0, %p282_p2  ;;  %s295_s18 = sshll.u32 %s2479_s17, 4  ;;  %s296_s18 = int_to_ptr.vmem [resolvable:$true] %s295_s18 }
  0x17   : > { %s317_s20 = sshll.u32 %s2480_s19, 4  ;;  %s2481_s22 = smov [#allocation14]   ;;  %s2589_s20 = int_to_ptr.vmem [resolvable:$true] %s317_s20 }
  0x18   : > { %s3320_s16 = scalar_select %p2576_p3, 1, 0 }
  0x19   : > { %p1888_p5 = pneg %p2576_p3  ;;  %s339_s23 = sshll.u32 %s2481_s22, 4  ;;  %s2591_s23 = int_to_ptr.vmem [resolvable:$true] %s339_s23 }
  0x1a   : > { %s3322_s3 = sld [smem:[#allocation33_spill]] }
  0x1b   : > { %p2585_p6 = pnand %p1888_p5, %p3288_p1 }
  0x1d   : > { %s3321_s21 = scalar_select %p2585_p6, 1, 0 }
  0x1e   : > { %p2601_p8 = pneg %p2585_p6 }
  0x20   : > { %s2121_s26 = scalar_lea.hbm %s3322_s3, 64 }
  0x21   : > { %p2122_p7 = scmp.ne.s32.totalorder %s3322_s3, %s2121_s26  ;;  %p2128_p11 = scmp.lt.u32.totalorder %s2121_s26, %s3322_s3 }
  0x22   : > { %s3323_s29 = scalar_select %p2601_p8, 1, 0 }
  0x23   : > { %p2124_p9 = pnand %p2601_p8, %p2122_p7 }
  0x25   : > { %p2125_p10 = pneg %p2124_p9 }
  0x27   : > { %p2130_p12 = pnand %p2128_p11, %p2125_p10 }
  0x29   : > { %2133 = shalt.err (!%p2130_p12)
}
  0x2a   : > { %s2134_s22 = scalar_lea.vmem %s296_s18, 64  ;;  %p2142_p5 = scmp.lt.s32.totalorder %s296_s18, %s296_s18 }
  0x2b   : > { %p2135_p13 = scmp.ne.s32.totalorder %s296_s18, %s2134_s22  ;;  %p2143_p4 = scmp.lt.s32.totalorder %s2134_s22, %s2134_s22 }
  0x2d   : > { %p2137_p0 = pnand %p2135_p13, %p2601_p8  ;;  %p2144_p1 = por %p2143_p4, %p2142_p5 }
  0x2f   : > { %p2138_p2 = pneg %p2137_p0 }
  0x31   : > { %p2145_p3 = pnand %p2144_p1, %p2138_p2 }
  0x33   : > { %2148 = shalt.err (!%p2145_p3)
}
  0x34   : > { %1891 = dma.hbm_to_vmem [thread:$0]  (!%p2585_p6), %s3322_s3, 64, %s296_s18, [#allocation9]  }
  0x35   : > { %s3324_s5 = sld [smem:[#allocation34_spill]] }
  0x3b   : > { %s2149_s28 = scalar_lea.hbm %s3324_s5, 16 }
  0x3c   : > { %p2150_p7 = scmp.ne.s32.totalorder %s3324_s5, %s2149_s28  ;;  %p2156_p1 = scmp.lt.u32.totalorder %s2149_s28, %s3324_s5 }
  0x3e   : > { %p2152_p9 = pnand %p2150_p7, %p2601_p8 }
  0x40   : > { %p2153_p4 = pneg %p2152_p9 }
  0x42   : > { %p2158_p3 = pnand %p2156_p1, %p2153_p4 }
  0x44   : > { %2161 = shalt.err (!%p2158_p3)
}
  0x45   : > { %s2162_s18 = scalar_lea.vmem %s2589_s20, 16  ;;  %s2169_s24 = scalar_lea.vmem %s2589_s20, 32 }
  0x46   : > { %p2163_p10 = scmp.ne.s32.totalorder %s2589_s20, %s2162_s18  ;;  %p2170_p13 = scmp.lt.s32.totalorder %s2589_s20, %s2589_s20 }
  0x47   : > { %p2171_p0 = scmp.lt.s32.totalorder %s2169_s24, %s2162_s18 }
  0x48   : > { %p2165_p11 = pnand %p2163_p10, %p2601_p8 }
  0x49   : > { %p2172_p2 = por %p2171_p0, %p2170_p13 }
  0x4a   : > { %p2166_p12 = pneg %p2165_p11 }
  0x4c   : > { %p2173_p5 = pnand %p2172_p2, %p2166_p12 }
  0x4e   : > { %2176 = shalt.err (!%p2173_p5)
}
  0x4f   : > { %1897 = dma.hbm_to_vmem [thread:$0]  (!%p2585_p6), %s3324_s5, 16, %s2589_s20, [#allocation12]  }
  0x50   : > { %s3325_s7 = sld [smem:[#allocation35_spill]] }
  0x56   : > { %s2177_s28 = scalar_lea.hbm %s3325_s7, 64 }
  0x57   : > { %p2178_p7 = scmp.ne.s32.totalorder %s3325_s7, %s2177_s28  ;;  %p2184_p1 = scmp.lt.u32.totalorder %s2177_s28, %s3325_s7 }
  0x59   : > { %p2180_p9 = pnand %p2178_p7, %p2601_p8 }
  0x5b   : > { %p2181_p4 = pneg %p2180_p9 }
  0x5d   : > { %p2186_p3 = pnand %p2184_p1, %p2181_p4 }
  0x5f   : > { %2189 = shalt.err (!%p2186_p3)
}
  0x60   : > { %s2190_s20 = scalar_lea.vmem %s2591_s23, 64  ;;  %p2198_p13 = scmp.lt.s32.totalorder %s2591_s23, %s2591_s23 }
  0x61   : > { %p2191_p10 = scmp.ne.s32.totalorder %s2591_s23, %s2190_s20  ;;  %p2199_p0 = scmp.lt.s32.totalorder %s2190_s20, %s2190_s20 }
  0x63   : > { %p2193_p11 = pnand %p2191_p10, %p2601_p8  ;;  %p2200_p2 = por %p2199_p0, %p2198_p13 }
  0x65   : > { %p2194_p12 = pneg %p2193_p11 }
  0x67   : > { %p2201_p5 = pnand %p2200_p2, %p2194_p12 }
  0x69   : > { %2204 = shalt.err (!%p2201_p5)
}
  0x6a   : > { %1903 = dma.hbm_to_vmem [thread:$0]  (!%p2585_p6), %s3325_s7, 64, %s2591_s23, [#allocation15]  }
  0x6b   : > { %s1669_s25 = sadd.s32 4294967294, %s2477_s14   ;;  %s43_s26 = sadd.s32 1, %s2473_s13 }
  0x6c   : > { %s52_s27 = sadd.s32 1, %s2465_s11  ;;  %p45_p7 = scmp.ge.s32.totalorder %s43_s26, 2 }
  0x6d   : > { %p59_p9 = scmp.ne.s32.totalorder %s2465_s11, %s2461_s10  ;;  %p60_p4 = scmp.eq.s32.totalorder %s2477_s14, 0 }
  0x6e   : > { %p65_p1 = scmp.ne.s32.totalorder %s2461_s10, %s2457_s30  ;;  %s3370_s26 = smov (%p45_p7, %s43_s26), 0 }
  0x6f   : > { %3326 = sst [smem:[#allocation28_spill]] %s3370_s26  ;;  %p61_p3 = por %p60_p4, %p59_p9 }
  0x70   : > { %p3327_p10 = scmp.eq.s32.totalorder %s2571_s15, 0  ;;  %s47_s23 = ssub.s32 %s2473_s13, %s3370_s26 }
  0x71   : > { %p269_p12 = scmp.eq.s32.totalorder %s2571_s15, 1  ;;  %p50_p13 = scmp.eq.s32.totalorder %s47_s23, 0 }
  0x72   : > { %p2676_p11 = por %p3327_p10, %p65_p1  ;;  %p275_p0 = scmp.eq.s32.totalorder %s1669_s25, 1 }
  0x73   : > { %p2683_p2 = por %p269_p12, %p59_p9  ;;  %p1927_p5 = scmp.lt.s32.totalorder %s2477_s14, 2 }
  0x74   : > { %s3328_s28 = scalar_select %p2676_p11, 1, 0 }
  0x75   : > { %s3329_s17 = scalar_select %p2683_p2, 1, 0 }
  0x76   : > { %s2689_s19 = scalar_select %p50_p13, %s2465_s11, %s52_s27  }
  0x77   : > { %3330 = sst [smem:[#allocation29_spill]] %s3329_s17  ;;  %p2691_p7 = por %p275_p0, %p65_p1 }
  0x78   : > { %3331 = sst [smem:[#allocation30_spill]] %s2689_s19  ;;  %s2696_s18 = sand.u32 1, %s2465_s11  }
  0x79   : > { %s3332_s22 = scalar_select %p2691_p7, 1, 0 }
  0x7a   : > { %p2698_p4 = pnand %p1927_p5, %p61_p3  ;;  %s382_s24 = sand.u32 1, %s2477_s14  }
  0x7b   : > { %3333 = sst [smem:[#allocation31_spill]] %s3332_s22  ;;  %s3292_s9 = sshll.u32 %s2696_s18, 2 }
  0x7c   : > { %s3334_s20 = scalar_select %p2698_p4, 1, 0 }
  0x7d   : > { %s3293_s25 = sshll.u32 %s2473_s13, 6  ;;  %s386_s23 = scalar_lea.vmem [#allocation5], %s3292_s9 }
  0x7e   : > { %s393_s27 = sshll.u32 %s386_s23, 4  ;;  %s3335_s1 = sld [smem:[#allocation32_spill]]  ;;  %s2714_s27 = int_to_ptr.vmem [resolvable:$true] %s393_s27 }
  0x7f   : > { %s2716_s26 = scalar_lea.sflag [#allocation6], %s382_s24  ;;  %p2722_p1 = pneg %p2698_p4 }
  0x81   : > { %s3336_s9 = scalar_select %p2722_p1, 1, 0 }
  0x84   : > { %s2712_s7 = scalar_lea.hbm %s3335_s1, %s3293_s25  ;;  %s2210_s23 = scalar_lea.hbm %s3335_s1, 128 }
  0x85   : > { %s2205_s19 = scalar_lea.hbm %s2712_s7, 64  ;;  %p2211_p12 = scmp.lt.u32.totalorder %s2712_s7, %s3335_s1 }
  0x86   : > { %p2206_p9 = scmp.ne.s32.totalorder %s2712_s7, %s2205_s19  ;;  %p2212_p13 = scmp.lt.u32.totalorder %s2210_s23, %s2205_s19 }
  0x87   : > { %p2214_p5 = scmp.lt.u32.totalorder %s2205_s19, %s2712_s7 }
  0x88   : > { %p2208_p3 = pnand %p2722_p1, %p2206_p9  ;;  %p2213_p0 = por %p2212_p13, %p2211_p12 }
  0x8a   : > { %p2209_p10 = pneg %p2208_p3  ;;  %p2215_p7 = por %p2214_p5, %p2213_p0 }
  0x8c   : > { %p2216_p2 = pnand %p2215_p7, %p2209_p10 }
  0x8e   : > { %2219 = shalt.err (!%p2216_p2)
}
  0x8f   : > { %s2220_s24 = scalar_lea.vmem %s2714_s27, 64  ;;  %s2482_s3 = smov [#allocation5]  }
  0x90   : > { %p2221_p9 = scmp.ne.s32.totalorder %s2714_s27, %s2220_s24  ;;  %s2225_s5 = sshll.u32 %s2482_s3, 4  ;;  %s2226_s5 = int_to_ptr.vmem [resolvable:$false] %s2225_s5 }
  0x91   : > { %s2227_s11 = scalar_lea.vmem %s2226_s5, 128  ;;  %p2228_p6 = scmp.lt.s32.totalorder %s2714_s27, %s2226_s5 }
  0x92   : > { %p2223_p3 = pnand %p2221_p9, %p2722_p1  ;;  %p2229_p8 = scmp.lt.s32.totalorder %s2227_s11, %s2220_s24 }
  0x94   : > { %p2224_p11 = pneg %p2223_p3  ;;  %p2230_p12 = por %p2229_p8, %p2228_p6 }
  0x96   : > { %p2231_p13 = pnand %p2230_p12, %p2224_p11 }
  0x98   : > { %2234 = shalt.err (!%p2231_p13)
}
  0x99   : > { %1913 = dma.hbm_to_vmem [thread:$0]  (!%p2698_p4), %s2712_s7, 64, %s2714_s27, %s2716_s26  }
  0x9a   : > { %s3337_s19 = sshll.u32 %s2473_s13, 6  ;;  %s2483_s1 = smov [#allocation10]  }
  0x9b   : > { %s2751_s3 = scalar_lea.hbm %s3280_s2, %s3337_s19  ;;  %s306_s5 = sshll.u32 %s2483_s1, 4  ;;  %s307_s5 = int_to_ptr.vmem [resolvable:$true] %s306_s5 }
  0x9c   : > { %s2484_s24 = smov [#allocation13]   ;;  %s2235_s30 = scalar_lea.hbm %s3282_s4, 128 }
  0x9d   : > { %s328_s11 = sshll.u32 %s2484_s24, 4  ;;  %p2236_p6 = scmp.ne.s32.totalorder %s3282_s4, %s2235_s30  ;;  %s2753_s11 = int_to_ptr.vmem [resolvable:$true] %s328_s11 }
  0x9e   : > { %p3338_p8 = scmp.ne.s32.totalorder %s3323_s29, 0  ;;  %p2242_p7 = scmp.lt.u32.totalorder %s2235_s30, %s3282_s4 }
  0xa0   : > { %p2238_p11 = pnand %p2236_p6, %p3338_p8 }
  0xa2   : > { %p2239_p2 = pneg %p2238_p11 }
  0xa4   : > { %p2244_p10 = pnand %p2242_p7, %p2239_p2 }
  0xa6   : > { %2247 = shalt.err (!%p2244_p10)
}
  0xa7   : > { %s2248_s1 = scalar_lea.vmem %s307_s5, 128  ;;  %p2256_p3 = scmp.lt.s32.totalorder %s307_s5, %s307_s5 }
  0xa8   : > { %p2249_p0 = scmp.ne.s32.totalorder %s307_s5, %s2248_s1  ;;  %p2257_p12 = scmp.lt.s32.totalorder %s2248_s1, %s2248_s1 }
  0xaa   : > { %p2251_p5 = pnand %p2249_p0, %p3338_p8  ;;  %p2258_p13 = por %p2257_p12, %p2256_p3 }
  0xac   : > { %p2252_p9 = pneg %p2251_p5 }
  0xae   : > { %p2259_p4 = pnand %p2258_p13, %p2252_p9 }
  0xb0   : > { %2262 = shalt.err (!%p2259_p4)
}
  0xb1   : > { %p3339_p6 = scmp.ne.s32.totalorder %s3321_s21, 0  ;;  %s2263_s22 = scalar_lea.hbm %s3284_s6, 64 }
  0xb2   : > { %p2264_p11 = scmp.ne.s32.totalorder %s3284_s6, %s2263_s22  ;;  %p2270_p4 = scmp.lt.u32.totalorder %s2263_s22, %s3284_s6 }
  0xb3   : > { %1894 = dma.hbm_to_vmem [thread:$0]  (!%p3339_p6), %s3282_s4, 128, %s307_s5, [#allocation9]  }
  0xb4   : > { %p2266_p2 = pnand %p2264_p11, %p3338_p8 }
  0xb6   : > { %p2267_p7 = pneg %p2266_p2 }
  0xb8   : > { %p2272_p10 = pnand %p2270_p4, %p2267_p7 }
  0xba   : > { %2275 = shalt.err (!%p2272_p10)
}
  0xbb   : > { %s2276_s5 = scalar_lea.vmem %s2753_s11, 64  ;;  %p2284_p3 = scmp.lt.s32.totalorder %s2753_s11, %s2753_s11 }
  0xbc   : > { %p2277_p0 = scmp.ne.s32.totalorder %s2753_s11, %s2276_s5  ;;  %p2285_p12 = scmp.lt.s32.totalorder %s2276_s5, %s2276_s5 }
  0xbe   : > { %p2279_p5 = pnand %p2277_p0, %p3338_p8  ;;  %p2286_p13 = por %p2285_p12, %p2284_p3 }
  0xc0   : > { %p2280_p9 = pneg %p2279_p5 }
  0xc2   : > { %p2287_p11 = pnand %p2286_p13, %p2280_p9 }
  0xc4   : > { %2290 = shalt.err (!%p2287_p11)
}
  0xc5   : > { %1900 = dma.hbm_to_vmem [thread:$0]  (!%p3339_p6), %s3284_s6, 64, %s2753_s11, [#allocation12]  }
  0xc6   : > { %s2485_s1 = smov [#allocation16]   ;;  %s1678_s14 = sshll.u32 %s2696_s18, 3 }
  0xc7   : > { %s350_s12 = sshll.u32 %s2485_s1, 4  ;;  %s2291_s22 = scalar_lea.hbm %s3286_s8, 128  ;;  %s351_s12 = int_to_ptr.vmem [resolvable:$true] %s350_s12 }
  0xc8   : > { %p2292_p2 = scmp.ne.s32.totalorder %s3286_s8, %s2291_s22  ;;  %p2298_p10 = scmp.lt.u32.totalorder %s2291_s22, %s3286_s8 }
  0xca   : > { %p2294_p7 = pnand %p2292_p2, %p3338_p8 }
  0xcc   : > { %p2295_p4 = pneg %p2294_p7 }
  0xce   : > { %p2300_p0 = pnand %p2298_p10, %p2295_p4 }
  0xd0   : > { %2303 = shalt.err (!%p2300_p0)
}
  0xd1   : > { %s2304_s11 = scalar_lea.vmem %s351_s12, 128  ;;  %p2312_p12 = scmp.lt.s32.totalorder %s351_s12, %s351_s12 }
  0xd2   : > { %p2305_p5 = scmp.ne.s32.totalorder %s351_s12, %s2304_s11  ;;  %p2313_p13 = scmp.lt.s32.totalorder %s2304_s11, %s2304_s11 }
  0xd4   : > { %p2307_p9 = pnand %p2305_p5, %p3338_p8  ;;  %p2314_p11 = por %p2313_p13, %p2312_p12 }
  0xd6   : > { %p2308_p3 = pneg %p2307_p9 }
  0xd8   : > { %p2315_p1 = pnand %p2314_p11, %p2308_p3 }
  0xda   : > { %2318 = shalt.err (!%p2315_p1)
}
  0xdb   : > { %1906 = dma.hbm_to_vmem [thread:$0]  (!%p3339_p6), %s3286_s8, 128, %s351_s12, [#allocation15]  }
  0xdc   : > { %s1725_s27 = sshll.u32 %s2473_s13, 7  ;;  %s365_s1 = scalar_lea.vmem [#allocation2], %s1678_s14 }
  0xdd   : > { %s375_s30 = sshll.u32 %s365_s1, 4  ;;  %s2819_s22 = scalar_lea.hbm %s3278_s0, %s1725_s27  ;;  %s376_s30 = int_to_ptr.vmem [resolvable:$true] %s375_s30 }
  0xde   : > { %s362_s21 = scalar_lea.sflag [#allocation3], %s2696_s18  ;;  %s2319_s19 = scalar_lea.hbm %s2819_s22, 128 }
  0xdf   : > { %p2320_p1 = scmp.ne.s32.totalorder %s2819_s22, %s2319_s19  ;;  %p3340_p8 = scmp.ne.s32.totalorder %s3336_s9, 0 }
  0xe0   : > { %s2324_s14 = scalar_lea.hbm %s3278_s0, 256  ;;  %p2325_p6 = scmp.lt.u32.totalorder %s2819_s22, %s3278_s0 }
  0xe1   : > { %p2322_p2 = pnand %p2320_p1, %p3340_p8  ;;  %p2326_p4 = scmp.lt.u32.totalorder %s2324_s14, %s2319_s19 }
  0xe2   : > { %p2328_p0 = scmp.lt.u32.totalorder %s2319_s19, %s2819_s22 }
  0xe3   : > { %p2323_p7 = pneg %p2322_p2  ;;  %p2327_p10 = por %p2326_p4, %p2325_p6 }
  0xe5   : > { %p2329_p5 = por %p2328_p0, %p2327_p10 }
  0xe7   : > { %p2330_p9 = pnand %p2329_p5, %p2323_p7 }
  0xe9   : > { %2333 = shalt.err (!%p2330_p9)
}
  0xea   : > { %s2334_s11 = scalar_lea.vmem %s376_s30, 128  ;;  %s2486_s5 = smov [#allocation2]  }
  0xeb   : > { %p2335_p3 = scmp.ne.s32.totalorder %s376_s30, %s2334_s11  ;;  %s2339_s7 = sshll.u32 %s2486_s5, 4  ;;  %s2340_s7 = int_to_ptr.vmem [resolvable:$false] %s2339_s7 }
  0xec   : > { %s2341_s27 = scalar_lea.vmem %s2340_s7, 256  ;;  %p2342_p11 = scmp.lt.s32.totalorder %s376_s30, %s2340_s7 }
  0xed   : > { %p2337_p12 = pnand %p2335_p3, %p3340_p8  ;;  %p2343_p1 = scmp.lt.s32.totalorder %s2341_s27, %s2334_s11 }
  0xef   : > { %p2338_p13 = pneg %p2337_p12  ;;  %p2344_p2 = por %p2343_p1, %p2342_p11 }
  0xf1   : > { %p2345_p4 = pnand %p2344_p2, %p2338_p13 }
  0xf3   : > { %2348 = shalt.err (!%p2345_p4)
}
  0xf4   : > { %p3341_p6 = scmp.ne.s32.totalorder %s3334_s20, 0  ;;  %s3342_s1 = sshll.u32 %s2696_s18, 2 }
  0xf5   : > { %s404_s29 = scalar_lea.vmem [#allocation7], %s3342_s1  ;;  %s2349_s19 = scalar_lea.hbm %s2751_s3, 64 }
  0xf6   : > { %1910 = dma.hbm_to_vmem [thread:$0]  (!%p3341_p6), %s2819_s22, 128, %s376_s30, %s362_s21  }
  0xf7   : > { %s411_s17 = sshll.u32 %s404_s29, 4  ;;  %p2350_p7 = scmp.ne.s32.totalorder %s2751_s3, %s2349_s19  ;;  %s412_s17 = int_to_ptr.vmem [resolvable:$true] %s411_s17 }
  0xf8   : > { %s2354_s14 = scalar_lea.hbm %s3280_s2, 128  ;;  %p2355_p5 = scmp.lt.u32.totalorder %s2751_s3, %s3280_s2 }
  0xf9   : > { %p2352_p10 = pnand %p2350_p7, %p3340_p8  ;;  %p2356_p9 = scmp.lt.u32.totalorder %s2354_s14, %s2349_s19 }
  0xfa   : > { %p2358_p12 = scmp.lt.u32.totalorder %s2349_s19, %s2751_s3 }
  0xfb   : > { %p2353_p0 = pneg %p2352_p10  ;;  %p2357_p3 = por %p2356_p9, %p2355_p5 }
  0xfd   : > { %p2359_p13 = por %p2358_p12, %p2357_p3 }
  0xff   : > { %p2360_p11 = pnand %p2359_p13, %p2353_p0 }
 0x101   : > { %2363 = shalt.err (!%p2360_p11)
}
 0x102   : > { %s2364_s18 = scalar_lea.vmem %s412_s17, 64  ;;  %s2487_s30 = smov [#allocation7]  }
 0x103   : > { %p2365_p1 = scmp.ne.s32.totalorder %s412_s17, %s2364_s18  ;;  %s2369_s22 = sshll.u32 %s2487_s30, 4  ;;  %s2370_s22 = int_to_ptr.vmem [resolvable:$false] %s2369_s22 }
 0x104   : > { %s2371_s21 = scalar_lea.vmem %s2370_s22, 128  ;;  %p2372_p7 = scmp.lt.s32.totalorder %s412_s17, %s2370_s22 }
 0x105   : > { %p2367_p2 = pnand %p2365_p1, %p3340_p8  ;;  %p2373_p10 = scmp.lt.s32.totalorder %s2371_s21, %s2364_s18 }
 0x107   : > { %p2368_p4 = pneg %p2367_p2  ;;  %p2374_p6 = por %p2373_p10, %p2372_p7 }
 0x109   : > { %p2375_p5 = pnand %p2374_p6, %p2368_p4 }
 0x10b   : > { %2378 = shalt.err (!%p2375_p5)
}
 0x10c   : > { %p3343_p9 = scmp.ne.s32.totalorder %s3334_s20, 0  ;;  %p3344_p0 = scmp.ne.s32.totalorder %s3320_s16, 0 }
 0x10d   : > { %s2862_s9 = sand.u32 (!%p3344_p0), 1, %s2461_s10   ;;  %p3345_p8 = scmp.ne.s32.totalorder (!%p3344_p0), %s3328_s28, 0 }
 0x10e   : > { %1916 = dma.hbm_to_vmem [thread:$0]  (!%p3343_p9), %s2751_s3, 64, %s412_s17, %s2716_s26  }
 0x10f   : > { %420 = sbr.rel (%p3344_p0) target bundleno = 1717 (0x6b5), region = 56  ;;  %s1686_s11 = sshll.u32 (!%p3344_p0), %s2862_s9, 3 }
 0x110   : > { %s423_s5 = scalar_lea.sflag (!%p3344_p0), [#allocation3], %s2862_s9  ;;  %s426_s7 = scalar_lea.vmem (!%p3344_p0), [#allocation2], %s1686_s11 }
 0x116   : > { %2432 = dma.done.wait (%p3345_p8), %s423_s5, 128  }
 0x117   : > { %2434 = vsyncadd (%p3345_p8), %s423_s5, 4294967168  ;;  %s431_s26 = sand.u32 1, %s2571_s15   ;;  %s1687_s16 = sshll.u32 %s2862_s9, 2 }
 0x118   : > { %s432_s20 = scalar_lea.sflag [#allocation6], %s431_s26  ;;  %s435_s3 = scalar_lea.vmem [#allocation5], %s1687_s16 }
 0x119   : > { %2436 = dma.done.wait (%p3345_p8), %s432_s20, 128  }
 0x11a   : > { %2438 = vsyncadd (%p3345_p8), %s432_s20, 4294967168  ;;  %s2876_s27 = scalar_lea.vmem [#allocation7], %s1687_s16  ;;  %p3346_p6 = scmp.eq.s32.totalorder %s2571_s15, 0 }
 0x11c   : > { %2440 = dma.done.wait (%p3346_p6), [#allocation9], 192   ;;  %p3347_p3 = pmov %p3346_p6 }
 0x11e   : > { %2442 = vsyncadd (%p3347_p3), [#allocation9], 4294967104  ;;  %p3348_p12 = pmov %p3347_p3 }
 0x11f   : > { %p3349_p13 = pmov %p3347_p3 }
 0x120   : > { %2444 = dma.done.wait (%p3348_p12), [#allocation12], 80  }
 0x121   : > { %2446 = vsyncadd (%p3349_p13), [#allocation12], 4294967216  ;;  %p3350_p11 = pmov %p3347_p3 }
 0x122   : > { %p3351_p1 = pmov %p3347_p3 }
 0x123   : > { %2448 = dma.done.wait (%p3350_p11), [#allocation15], 192  }
 0x124   : > { %2450 = vsyncadd (%p3351_p1), [#allocation15], 4294967104  ;;  %v2488_v0 = vmov 0   ;;  %v516_v1 = vld [vmem:[%s426_s7] sm:$0xff]  ;;  %vm533_vm0 = vcmask 1043456   ;;  %vm529_vm1 = vcmask 64512  }
 0x125   : > { %572 = vmatprep.mubr.bf16.mxu0 %v2488_v0  ;;  %1990 = vset.pattern.permute.xlu0 %v2488_v0  ;;  %v1697_v2 = vcombine.high %v516_v1, %v516_v1  ;;  %v1696_v3 = vcombine.low %v516_v1, %v516_v1  ;;  %v518_v4 = vld [vmem:[#allocation10] sm:$0xff]  ;;  %v517_v6 = vld [vmem:[#allocation8] sm:$0xf]  ;;  %v585_v7 = vld [vmem:[%s435_s3] sm:$0xf]  ;;  %s3352_s15 = sld [smem:[#allocation26_spill]] }
 0x126   : > { %521 = vperm.xlu0 %1990, %v518_v4   ;;  %1847 = vmatprep.subr.msk.bf16.mxu1 %vm533_vm0, %v585_v7  ;;  %v674_v8 = vsel %vm533_vm0, %v585_v7, 0  ;;  %v2910_v36 = vld [vmem:[#allocation11] ss:$0 sm:$0xff]  ;;  %s1695_s28 = sshll.u32 %s2862_s9, 4  ;;  %s3353_s29 = sld [smem:[#allocation29_spill]] }
 0x127   : > { %1698 = vmatprep.subr.msk.bf16.mxu0 %vm533_vm0, %v1697_v2  ;;  %v535_v5 = vsel %vm533_vm0, %v1696_v3, 0  ;;  %1780 = vmatpush3.bf16.msra.mxu1 %v674_v8  ;;  %s512_s17 = scalar_lea.vmem [#allocation17], %s1695_s28  ;;  %s3354_s14 = sld [smem:[#allocation36_spill]] }
 0x128   : > { %541 = vmatpush1.bf16.msra.mxu0 %v535_v5  ;;  %1717 = vmatprep.subr.msk.bf16.mxu1 %vm533_vm0, %v1697_v2  ;;  %s1484_s19 = sshll.u32 %s512_s17, 4  ;;  %s1468_s18 = scalar_lea.sflag [#allocation4], %s2862_s9  ;;  %s3231_s19 = int_to_ptr.vmem [resolvable:$true] %s1484_s19 }
 0x129   : > { %s2379_s30 = scalar_lea.vmem %s3231_s19, 256  ;;  %s2489_s22 = smov [#allocation17]  }
 0x12a   : > { %p2380_p2 = scmp.ne.s32.totalorder %s3231_s19, %s2379_s30  ;;  %s2383_s21 = sshll.u32 %s2489_s22, 4  ;;  %s2384_s21 = int_to_ptr.vmem [resolvable:$false] %s2383_s21 }
 0x12b   : > { %1699 = vmatmul.mubr.msk.bf16.vlgmr.msra.gmra.mrb[0].mxu0 %vm529_vm1, %v517_v6  ;;  %s1726_s1 = sshll.u32 %s3352_s15, 8  ;;  %s2385_s11 = scalar_lea.vmem %s2384_s21, 512 }
 0x12c   : > { %p3356_p4 = scmp.ne.s32.totalorder %s3353_s29, 0  ;;  %p2386_p5 = scmp.lt.s32.totalorder %s3231_s19, %s2384_s21 }
 0x12d   : > { %s3355_s23 = smov %s3354_s14  ;;  %s3229_s24 = scalar_lea.hbm %s3354_s14, %s1726_s1 }
 0x12e   : > { %p2381_p7 = pnand %p2380_p2, %p3356_p4  ;;  %p2387_p9 = scmp.lt.s32.totalorder %s2385_s11, %s2379_s30 }
 0x130   : > { %p2382_p10 = pneg %p2381_p7  ;;  %p2388_p0 = por %p2387_p9, %p2386_p5 }
 0x132   : > { %p2389_p8 = pnand %p2388_p0, %p2382_p10 }
 0x1a5   : > { %v522_v9 = vpop.permute.xlu0 %521 }
 0x1fe   : > { %v574_v10 = vpop.f32.mrb[0].mxu0 }
 0x1ff   : > { %v575_v11 = vadd.f32 %v574_v10, %v522_v9  ;;  %v576_v12 = vpop.f32.mrb[1].mxu0 }
 0x200   : > { %v577_v13 = vadd.f32 %v576_v12, %v522_v9  ;;  %v578_v14 = vpop.f32.mrb[2].mxu0 }
 0x201   : > { %v581_v15 = vmax.f32 %v575_v11, 0.0  ;;  %v579_v16 = vpop.f32.mrb[3].mxu0 }
 0x202   : > { %v582_v17 = vmax.f32 %v577_v13, 0.0 }
 0x203   : > { %v583_v18 = vpack.c.bf16 %v581_v15, %v581_v15 }
 0x204   : > { %v584_v19 = vpack.c.bf16 %v582_v17, %v582_v17 }
 0x205   : > { %593 = vxpose.xlu0.c.b16.start.end [1/1] (short) %v583_v18, 128 }
 0x206   : > { %609 = vxpose.xlu1.c.b16.start.end [1/1] (short) %v584_v19, 128 }
 0x26b   : > { %v601_v20 = vpop.trf.xlu0 }
 0x26c   : > { %1781 = vmatprep.mubr.msk.bf16.mxu1 %vm529_vm1, %v601_v20  ;;  %v617_v25 = vpop.trf.xlu1 }
 0x26f   : > { %v602_v21 = vpop.trf.xlu0 }
 0x270   : > { %1782 = vmatmul.mubr.msk.bf16.vlgmr.msra.gmra.mrb[0].mxu1 %vm529_vm1, %v602_v21  ;;  %v618_v27 = vpop.trf.xlu1 }
 0x271   : > { %1325 = vmatpush1.bf16.msra.mxu1 %v535_v5 }
 0x273   : > { %v603_v22 = vpop.trf.xlu0 }
 0x274   : > { %1785 = vmatprep.mubr.msk.bf16.mxu1 %vm529_vm1, %v603_v22  ;;  %v619_v30 = vpop.trf.xlu1 }
 0x277   : > { %v604_v23 = vpop.trf.xlu0 }
 0x278   : > { %1786 = vmatmul.mubr.msk.bf16.gmra.mrb[4].mxu1 %vm529_vm1, %v604_v23  ;;  %v620_v31 = vpop.trf.xlu1 }
 0x27b   : > { %v605_v24 = vpop.trf.xlu0 }
 0x27c   : > { %1789 = vmatprep.mubr.msk.bf16.mxu1 %vm529_vm1, %v605_v24  ;;  %v621_v32 = vpop.trf.xlu1 }
 0x27f   : > { %v606_v26 = vpop.trf.xlu0 }
 0x280   : > { %1790 = vmatmul.mubr.msk.bf16.gmra.mrb[8].mxu1 %vm529_vm1, %v606_v26  ;;  %v622_v33 = vpop.trf.xlu1 }
 0x283   : > { %v607_v28 = vpop.trf.xlu0 }
 0x284   : > { %1793 = vmatprep.mubr.msk.bf16.mxu1 %vm529_vm1, %v607_v28  ;;  %v623_v34 = vpop.trf.xlu1 }
 0x287   : > { %v608_v29 = vpop.trf.xlu0 }
 0x288   : > { %1794 = vmatmul.mubr.msk.bf16.gmra.mrb[12].mxu1 %vm529_vm1, %v608_v29  ;;  %v624_v35 = vpop.trf.xlu1 }
 0x289   : > { %1797 = vmatprep.mubr.msk.bf16.mxu1 %vm529_vm1, %v617_v25 }
 0x290   : > { %1798 = vmatmul.mubr.msk.bf16.gmra.mrb[16].mxu1 %vm529_vm1, %v618_v27 }
 0x291   : > { %1801 = vmatprep.mubr.msk.bf16.mxu1 %vm529_vm1, %v619_v30 }
 0x298   : > { %1802 = vmatmul.mubr.msk.bf16.gmra.mrb[20].mxu1 %vm529_vm1, %v620_v31 }
 0x299   : > { %1805 = vmatprep.mubr.msk.bf16.mxu1 %vm529_vm1, %v621_v32 }
 0x2a0   : > { %1806 = vmatmul.mubr.msk.bf16.gmra.mrb[24].mxu1 %vm529_vm1, %v622_v33 }
 0x2a1   : > { %1809 = vmatprep.mubr.msk.bf16.mxu1 %vm529_vm1, %v623_v34 }
 0x2a8   : > { %1810 = vmatmul.mubr.msk.bf16.gmra.mrb[28].mxu1 %vm529_vm1, %v624_v35 }
 0x2a9   : > { %1356 = vmatprep.mubr.bf16.mxu1 %v2488_v0 }
 0x343   : > { %v1783_v37 = vpop.f32.mrb[0].mxu1 }
 0x344   : > { %v710_v38 = vpop.f32.mrb[1].mxu1  ;;  %v2920_v43 = vadd.f32 %v1783_v37, %v2910_v36 }
 0x345   : > { %v2913_v39 = vadd.f32 %v2910_v36, %v710_v38  ;;  %v1784_v40 = vpop.f32.mrb[2].mxu1 }
 0x346   : > { %v713_v41 = vpop.f32.mrb[3].mxu1  ;;  %v2925_v46 = vadd.f32 %v1784_v40, %v2910_v36 }
 0x347   : > { %v2916_v42 = vadd.f32 %v2910_v36, %v713_v41  ;;  %837 = vmax.xlane.f32.xlu1 %v2913_v39 }
 0x349   : > { %839 = vmax.xlane.f32.xlu0 %v2916_v42 }
 0x34b   : > { %841 = vmax.xlane.f32.xlu1 %v2920_v43  ;;  %v1787_v44 = vpop.f32.mrb[4].mxu1 }
 0x34c   : > { %v726_v45 = vpop.f32.mrb[5].mxu1  ;;  %v2928_v49 = vadd.f32 %v1787_v44, %v2910_v36 }
 0x34d   : > { %v1788_v47 = vpop.f32.mrb[6].mxu1  ;;  %v2936_v53 = vadd.f32 %v2910_v36, %v726_v45 }
 0x34e   : > { %v729_v48 = vpop.f32.mrb[7].mxu1  ;;  %v2941_v56 = vadd.f32 %v1788_v47, %v2910_v36 }
 0x34f   : > { %843 = vmax.xlane.f32.xlu1 %v2925_v46  ;;  %v2945_v59 = vadd.f32 %v2910_v36, %v729_v48 }
 0x353   : > { %849 = vmax.xlane.f32.xlu1 %v2928_v49  ;;  %v1791_v50 = vpop.f32.mrb[8].mxu1 }
 0x354   : > { %v2933_v51 = vadd.f32 %v1791_v50, %v2910_v36  ;;  %v742_v52 = vpop.f32.mrb[9].mxu1 }
 0x355   : > { %v1792_v54 = vpop.f32.mrb[10].mxu1  ;;  %v2951_v63 = vadd.f32 %v2910_v36, %v742_v52 }
 0x356   : > { %857 = vmax.xlane.f32.xlu0 %v2933_v51  ;;  %v745_v55 = vpop.f32.mrb[11].mxu1  ;;  %v2972_v8 = vadd.f32 %v1792_v54, %v2910_v36 }
 0x357   : > { %845 = vmax.xlane.f32.xlu1 %v2936_v53  ;;  %v2961_v3 = vadd.f32 %v2910_v36, %v745_v55 }
 0x35b   : > { %851 = vmax.xlane.f32.xlu1 %v2941_v56  ;;  %v1795_v57 = vpop.f32.mrb[12].mxu1 }
 0x35c   : > { %v758_v58 = vpop.f32.mrb[13].mxu1  ;;  %v2954_v0 = vadd.f32 %v1795_v57, %v2910_v36 }
 0x35d   : > { %v2948_v60 = vadd.f32 %v2910_v36, %v758_v58  ;;  %v1796_v61 = vpop.f32.mrb[14].mxu1 }
 0x35e   : > { %v761_v62 = vpop.f32.mrb[15].mxu1  ;;  %v2988_v16 = vadd.f32 %v1796_v61, %v2910_v36 }
 0x35f   : > { %847 = vmax.xlane.f32.xlu1 %v2945_v59  ;;  %861 = vmax.xlane.f32.xlu0 %v2948_v60  ;;  %v2977_v11 = vadd.f32 %v2910_v36, %v761_v62 }
 0x363   : > { %853 = vmax.xlane.f32.xlu1 %v2951_v63  ;;  %v1799_v1 = vpop.f32.mrb[16].mxu1  ;;  %865 = vmax.xlane.f32.xlu0 %v2954_v0 }
 0x364   : > { %v774_v2 = vpop.f32.mrb[17].mxu1  ;;  %v2967_v7 = vadd.f32 %v1799_v1, %v2910_v36 }
 0x365   : > { %v2964_v4 = vadd.f32 %v2910_v36, %v774_v2  ;;  %v1800_v5 = vpop.f32.mrb[18].mxu1 }
 0x366   : > { %v777_v6 = vpop.f32.mrb[19].mxu1  ;;  %v3010_v26 = vadd.f32 %v1800_v5, %v2910_v36 }
 0x367   : > { %855 = vmax.xlane.f32.xlu1 %v2961_v3  ;;  %869 = vmax.xlane.f32.xlu0 %v2964_v4  ;;  %v2993_v19 = vadd.f32 %v2910_v36, %v777_v6 }
 0x36b   : > { %859 = vmax.xlane.f32.xlu1 %v2972_v8  ;;  %v1803_v9 = vpop.f32.mrb[20].mxu1  ;;  %873 = vmax.xlane.f32.xlu0 %v2967_v7 }
 0x36c   : > { %v790_v10 = vpop.f32.mrb[21].mxu1  ;;  %v2983_v15 = vadd.f32 %v1803_v9, %v2910_v36 }
 0x36d   : > { %v2980_v12 = vadd.f32 %v2910_v36, %v790_v10  ;;  %v1804_v13 = vpop.f32.mrb[22].mxu1 }
 0x36e   : > { %v793_v14 = vpop.f32.mrb[23].mxu1  ;;  %v3024_v34 = vadd.f32 %v1804_v13, %v2910_v36 }
 0x36f   : > { %863 = vmax.xlane.f32.xlu1 %v2977_v11  ;;  %877 = vmax.xlane.f32.xlu0 %v2980_v12  ;;  %v3013_v27 = vadd.f32 %v2910_v36, %v793_v14 }
 0x373   : > { %v1807_v17 = vpop.f32.mrb[24].mxu1  ;;  %867 = vmax.xlane.f32.xlu1 %v2988_v16  ;;  %881 = vmax.xlane.f32.xlu0 %v2983_v15 }
 0x374   : > { %v806_v18 = vpop.f32.mrb[25].mxu1  ;;  %v3002_v24 = vadd.f32 %v1807_v17, %v2910_v36 }
 0x375   : > { %v2996_v20 = vadd.f32 %v2910_v36, %v806_v18  ;;  %v1808_v21 = vpop.f32.mrb[26].mxu1 }
 0x376   : > { %v2999_v22 = vadd.f32 %v1808_v21, %v2910_v36  ;;  %v809_v23 = vpop.f32.mrb[27].mxu1 }
 0x377   : > { %871 = vmax.xlane.f32.xlu1 %v2993_v19  ;;  %885 = vmax.xlane.f32.xlu0 %v2996_v20  ;;  %v3007_v25 = vadd.f32 %v2910_v36, %v809_v23 }
 0x37b   : > { %875 = vmax.xlane.f32.xlu1 %v3010_v26  ;;  %889 = vmax.xlane.f32.xlu0 %v3002_v24  ;;  %v1811_v28 = vpop.f32.mrb[28].mxu1 }
 0x37c   : > { %v3018_v29 = vadd.f32 %v1811_v28, %v2910_v36  ;;  %v822_v30 = vpop.f32.mrb[29].mxu1 }
 0x37d   : > { %v1812_v31 = vpop.f32.mrb[30].mxu1  ;;  %v3029_v35 = vadd.f32 %v2910_v36, %v822_v30 }
 0x37e   : > { %v3021_v32 = vadd.f32 %v1812_v31, %v2910_v36  ;;  %v825_v33 = vpop.f32.mrb[31].mxu1 }
 0x37f   : > { %879 = vmax.xlane.f32.xlu1 %v3013_v27  ;;  %897 = vmax.xlane.f32.xlu0 %v3018_v29  ;;  %v3032_v37 = vadd.f32 %v2910_v36, %v825_v33 }
 0x383   : > { %883 = vmax.xlane.f32.xlu1 %v3024_v34  ;;  %893 = vmax.xlane.f32.xlu0 %v3029_v35 }
 0x387   : > { %887 = vmax.xlane.f32.xlu1 %v3007_v25 }
 0x38b   : > { %891 = vmax.xlane.f32.xlu1 %v2999_v22 }
 0x38f   : > { %899 = vmax.xlane.f32.xlu1 %v3021_v32 }
 0x393   : > { %895 = vmax.xlane.f32.xlu1 %v3032_v37 }
 0x3d4   : > { %v838_v38 = vpop.xlane.xlu1 %837 }
 0x3d5   : > { %v901_v40 = vsub.f32 %v2913_v39, %v838_v38 }
 0x3d6   : > { %v840_v41 = vpop.xlane.xlu0 %839 }
 0x3d7   : > { %v933_v44 = vmul.f32 1.442695, %v901_v40  ;;  %v902_v36 = vsub.f32 %v2916_v42, %v840_v41 }
 0x3d8   : > { %v842_v45 = vpop.xlane.xlu1 %841 }
 0x3d9   : > { %1993 = vpow2.f32 %v933_v44  ;;  %v935_v47 = vmul.f32 1.442695, %v902_v36  ;;  %v903_v48 = vsub.f32 %v2920_v43, %v842_v45  ;;  %v1141_v45 = vld [vmem:[%s2876_s27] sm:$0xf] }
 0x3da   : > { %1813 = vmatprep.subr.bf16.mxu0 %v1141_v45 }
 0x3db   : > { %1995 = vpow2.f32 %v935_v47  ;;  %v937_v50 = vmul.f32 1.442695, %v903_v48  ;;  %1814 = vmatpush3.bf16.xpose.msra.mxu0 %v1141_v45 }
 0x3dc   : > { %v844_v52 = vpop.xlane.xlu1 %843 }
 0x3dd   : > { %1997 = vpow2.f32 %v937_v50  ;;  %v904_v54 = vsub.f32 %v2925_v46, %v844_v52 }
 0x3df   : > { %v939_v55 = vmul.f32 1.442695, %v904_v54 }
 0x3e0   : > { %v850_v57 = vpop.xlane.xlu1 %849 }
 0x3e1   : > { %1999 = vpow2.f32 %v939_v55  ;;  %v907_v61 = vsub.f32 %v2928_v49, %v850_v57 }
 0x3e3   : > { %v3044_v58 = vpop.eup %1993  ;;  %v858_v46 = vpop.xlane.xlu0 %857  ;;  %v945_v5 = vmul.f32 1.442695, %v907_v61 }
 0x3e4   : > { %v846_v39 = vpop.xlane.xlu1 %845  ;;  %997 = vadd.xlane.f32.xlu0 %v3044_v58  ;;  %v911_v14 = vsub.f32 %v2933_v51, %v858_v46 }
 0x3e5   : > { %v3047_v42 = vpop.eup %1995  ;;  %v905_v43 = vsub.f32 %v2936_v53, %v846_v39 }
 0x3e6   : > { %999 = vadd.xlane.f32.xlu1 %v3047_v42 }
 0x3e7   : > { %v3052_v62 = vpop.eup %1997  ;;  %v941_v1 = vmul.f32 1.442695, %v905_v43 }
 0x3e8   : > { %v852_v2 = vpop.xlane.xlu1 %851  ;;  %1001 = vadd.xlane.f32.xlu0 %v3052_v62 }
 0x3e9   : > { %2001 = vpow2.f32 %v941_v1  ;;  %v908_v9 = vsub.f32 %v2941_v56, %v852_v2  ;;  %v953_v56 = vmul.f32 1.442695, %v911_v14 }
 0x3ea   : > { %2003 = vpow2.f32 %v945_v5 }
 0x3eb   : > { %v3055_v6 = vpop.eup %1999  ;;  %v947_v17 = vmul.f32 1.442695, %v908_v9 }
 0x3ec   : > { %v848_v10 = vpop.xlane.xlu1 %847  ;;  %1003 = vadd.xlane.f32.xlu1 %v3055_v6  ;;  %v862_v49 = vpop.xlane.xlu0 %861 }
 0x3ed   : > { %v906_v53 = vsub.f32 %v2945_v59, %v848_v10  ;;  %v913_v31 = vsub.f32 %v2948_v60, %v862_v49 }
 0x3ef   : > { %v943_v13 = vmul.f32 1.442695, %v906_v53 }
 0x3f0   : > { %v854_v18 = vpop.xlane.xlu1 %853  ;;  %v866_v21 = vpop.xlane.xlu0 %865 }
 0x3f1   : > { %2005 = vpow2.f32 %v943_v13  ;;  %v909_v23 = vsub.f32 %v2951_v63, %v854_v18  ;;  %v957_v63 = vmul.f32 1.442695, %v913_v31  ;;  %v915_v41 = vsub.f32 %v2954_v0, %v866_v21 }
 0x3f2   : > { %2007 = vpow2.f32 %v947_v17 }
 0x3f3   : > { %v3062_v28 = vpop.eup %2001  ;;  %v949_v30 = vmul.f32 1.442695, %v909_v23 }
 0x3f4   : > { %v856_v33 = vpop.xlane.xlu1 %855  ;;  %1005 = vadd.xlane.f32.xlu0 %v3062_v28  ;;  %v870_v59 = vpop.xlane.xlu0 %869 }
 0x3f5   : > { %2009 = vpow2.f32 %v949_v30  ;;  %v910_v51 = vsub.f32 %v2961_v3, %v856_v33  ;;  %v3067_v38 = vpop.eup %2003  ;;  %v961_v3 = vmul.f32 1.442695, %v915_v41  ;;  %v917_v50 = vsub.f32 %v2964_v4, %v870_v59 }
 0x3f6   : > { %2011 = vpow2.f32 %v953_v56 }
 0x3f7   : > { %v951_v40 = vmul.f32 1.442695, %v910_v51  ;;  %v965_v39 = vmul.f32 1.442695, %v917_v50 }
 0x3f8   : > { %v860_v44 = vpop.xlane.xlu1 %859  ;;  %1009 = vadd.xlane.f32.xlu0 %v3067_v38  ;;  %v874_v36 = vpop.xlane.xlu0 %873 }
 0x3f9   : > { %2013 = vpow2.f32 %v951_v40  ;;  %v912_v60 = vsub.f32 %v2972_v8, %v860_v44  ;;  %v919_v61 = vsub.f32 %v2967_v7, %v874_v36 }
 0x3fa   : > { %2015 = vpow2.f32 %v957_v63 }
 0x3fb   : > { %v3073_v47 = vpop.eup %2005  ;;  %v955_v48 = vmul.f32 1.442695, %v912_v60  ;;  %v969_v5 = vmul.f32 1.442695, %v919_v61 }
 0x3fc   : > { %v864_v52 = vpop.xlane.xlu1 %863  ;;  %1007 = vadd.xlane.f32.xlu1 %v3073_v47  ;;  %v878_v0 = vpop.xlane.xlu0 %877 }
 0x3fd   : > { %2017 = vpow2.f32 %v955_v48  ;;  %v914_v54 = vsub.f32 %v2977_v11, %v864_v52  ;;  %v3078_v55 = vpop.eup %2007  ;;  %v921_v9 = vsub.f32 %v2980_v12, %v878_v0 }
 0x3fe   : > { %2019 = vpow2.f32 %v961_v3 }
 0x3ff   : > { %v3080_v8 = vpop.eup %2009  ;;  %v959_v57 = vmul.f32 1.442695, %v914_v54  ;;  %v973_v14 = vmul.f32 1.442695, %v921_v9 }
 0x400   : > { %v868_v43 = vpop.xlane.xlu1 %867  ;;  %1013 = vadd.xlane.f32.xlu0 %v3080_v8  ;;  %1011 = vadd.xlane.f32.xlu1 %v3078_v55  ;;  %v882_v4 = vpop.xlane.xlu0 %881 }
 0x401   : > { %2021 = vpow2.f32 %v959_v57  ;;  %v916_v1 = vsub.f32 %v2988_v16, %v868_v43  ;;  %v3086_v46 = vpop.eup %2011  ;;  %v923_v17 = vsub.f32 %v2983_v15, %v882_v4 }
 0x402   : > { %2023 = vpow2.f32 %v965_v39 }
 0x403   : > { %v3088_v11 = vpop.eup %2013  ;;  %v963_v2 = vmul.f32 1.442695, %v916_v1  ;;  %v977_v56 = vmul.f32 1.442695, %v923_v17 }
 0x404   : > { %v872_v10 = vpop.xlane.xlu1 %871  ;;  %1015 = vadd.xlane.f32.xlu1 %v3088_v11  ;;  %1017 = vadd.xlane.f32.xlu0 %v3086_v46  ;;  %v886_v7 = vpop.xlane.xlu0 %885 }
 0x405   : > { %2025 = vpow2.f32 %v963_v2  ;;  %v918_v49 = vsub.f32 %v2993_v19, %v872_v10  ;;  %v3094_v53 = vpop.eup %2015  ;;  %v925_v31 = vsub.f32 %v2996_v20, %v886_v7 }
 0x406   : > { %2027 = vpow2.f32 %v969_v5 }
 0x407   : > { %v3096_v16 = vpop.eup %2017  ;;  %v967_v13 = vmul.f32 1.442695, %v918_v49  ;;  %v981_v63 = vmul.f32 1.442695, %v925_v31 }
 0x408   : > { %v876_v18 = vpop.xlane.xlu1 %875  ;;  %1019 = vadd.xlane.f32.xlu1 %v3096_v16  ;;  %1021 = vadd.xlane.f32.xlu0 %v3094_v53  ;;  %v890_v12 = vpop.xlane.xlu0 %889 }
 0x409   : > { %2029 = vpow2.f32 %v967_v13  ;;  %v920_v21 = vsub.f32 %v3010_v26, %v876_v18  ;;  %v3102_v23 = vpop.eup %2019  ;;  %v927_v41 = vsub.f32 %v3002_v24, %v890_v12  ;;  %v1457_v12 = vld [vmem:[#allocation16] sm:$0xff] }
 0x40a   : > { %2031 = vpow2.f32 %v973_v14 }
 0x40b   : > { %v3104_v19 = vpop.eup %2021  ;;  %v971_v30 = vmul.f32 1.442695, %v920_v21  ;;  %v985_v48 = vmul.f32 1.442695, %v927_v41 }
 0x40c   : > { %v880_v33 = vpop.xlane.xlu1 %879  ;;  %1023 = vadd.xlane.f32.xlu1 %v3104_v19  ;;  %1025 = vadd.xlane.f32.xlu0 %v3102_v23  ;;  %v898_v15 = vpop.xlane.xlu0 %897 }
 0x40d   : > { %2033 = vpow2.f32 %v971_v30  ;;  %v922_v59 = vsub.f32 %v3013_v27, %v880_v33  ;;  %v3110_v51 = vpop.eup %2023 }
 0x40e   : > { %2035 = vpow2.f32 %v977_v56 }
 0x40f   : > { %v3112_v26 = vpop.eup %2025  ;;  %v975_v40 = vmul.f32 1.442695, %v922_v59 }
 0x410   : > { %v884_v44 = vpop.xlane.xlu1 %883  ;;  %1027 = vadd.xlane.f32.xlu1 %v3112_v26  ;;  %1029 = vadd.xlane.f32.xlu0 %v3110_v51  ;;  %v894_v36 = vpop.xlane.xlu0 %893 }
 0x411   : > { %2037 = vpow2.f32 %v975_v40  ;;  %v924_v20 = vsub.f32 %v3024_v34, %v884_v44  ;;  %v3118_v60 = vpop.eup %2027  ;;  %v929_v3 = vsub.f32 %v3029_v35, %v894_v36  ;;  %v931_v35 = vsub.f32 %v3018_v29, %v898_v15 }
 0x412   : > { %2039 = vpow2.f32 %v981_v63 }
 0x413   : > { %v3120_v27 = vpop.eup %2029  ;;  %v979_v45 = vmul.f32 1.442695, %v924_v20  ;;  %v989_v54 = vmul.f32 1.442695, %v929_v3  ;;  %v993_v1 = vmul.f32 1.442695, %v931_v35 }
 0x414   : > { %v888_v50 = vpop.xlane.xlu1 %887  ;;  %1031 = vadd.xlane.f32.xlu1 %v3120_v27  ;;  %1033 = vadd.xlane.f32.xlu0 %v3118_v60  ;;  %v3126_v52 = vpop.eup %2031 }
 0x415   : > { %2041 = vpow2.f32 %v979_v45  ;;  %v926_v24 = vsub.f32 %v3007_v25, %v888_v50 }
 0x416   : > { %2043 = vpow2.f32 %v985_v48 }
 0x417   : > { %v3128_v34 = vpop.eup %2033  ;;  %v983_v0 = vmul.f32 1.442695, %v926_v24 }
 0x418   : > { %v892_v57 = vpop.xlane.xlu1 %891  ;;  %1035 = vadd.xlane.f32.xlu1 %v3128_v34  ;;  %1037 = vadd.xlane.f32.xlu0 %v3126_v52  ;;  %v3134_v61 = vpop.eup %2035 }
 0x419   : > { %2045 = vpow2.f32 %v983_v0  ;;  %v928_v39 = vsub.f32 %v2999_v22, %v892_v57 }
 0x41a   : > { %2047 = vpow2.f32 %v989_v54 }
 0x41b   : > { %v3136_v25 = vpop.eup %2037  ;;  %v987_v43 = vmul.f32 1.442695, %v928_v39 }
 0x41c   : > { %v900_v4 = vpop.xlane.xlu1 %899  ;;  %1039 = vadd.xlane.f32.xlu1 %v3136_v25  ;;  %1041 = vadd.xlane.f32.xlu0 %v3134_v61  ;;  %v3140_v2 = vpop.eup %2039 }
 0x41d   : > { %2049 = vpow2.f32 %v987_v43  ;;  %v932_v22 = vsub.f32 %v3021_v32, %v900_v4 }
 0x41e   : > { %2051 = vpow2.f32 %v993_v1 }
 0x41f   : > { %v3142_v5 = vpop.eup %2041  ;;  %v995_v13 = vmul.f32 1.442695, %v932_v22 }
 0x420   : > { %v896_v29 = vpop.xlane.xlu1 %895  ;;  %1043 = vadd.xlane.f32.xlu1 %v3142_v5  ;;  %1045 = vadd.xlane.f32.xlu0 %v3140_v2  ;;  %v3148_v10 = vpop.eup %2043 }
 0x421   : > { %v930_v9 = vsub.f32 %v3032_v37, %v896_v29 }
 0x423   : > { %v3150_v7 = vpop.eup %2045  ;;  %v991_v49 = vmul.f32 1.442695, %v930_v9 }
 0x424   : > { %1047 = vadd.xlane.f32.xlu1 %v3150_v7  ;;  %1049 = vadd.xlane.f32.xlu0 %v3148_v10  ;;  %v3154_v14 = vpop.eup %2047 }
 0x425   : > { %2053 = vpow2.f32 %v991_v49 }
 0x426   : > { %2055 = vpow2.f32 %v995_v13 }
 0x427   : > { %v3156_v17 = vpop.eup %2049 }
 0x428   : > { %1051 = vadd.xlane.f32.xlu1 %v3156_v17  ;;  %1053 = vadd.xlane.f32.xlu0 %v3154_v14  ;;  %v3160_v32 = vpop.eup %2051 }
 0x42c   : > { %1057 = vadd.xlane.f32.xlu0 %v3160_v32 }
 0x42f   : > { %v3163_v37 = vpop.eup %2053 }
 0x430   : > { %1055 = vadd.xlane.f32.xlu1 %v3163_v37  ;;  %v3166_v18 = vpop.eup %2055 }
 0x434   : > { %1059 = vadd.xlane.f32.xlu1 %v3166_v18 }
 0x442   : > { %1460 = vperm.xlu0 %1990, %v1457_v12  }
 0x471   : > { %v998_v21 = vpop.xlane.xlu0 %997 }
 0x472   : > { %2057 = vrcp.f32 %v998_v21 }
 0x473   : > { %v1000_v30 = vpop.xlane.xlu1 %999 }
 0x474   : > { %2059 = vrcp.f32 %v1000_v30 }
 0x475   : > { %v1002_v56 = vpop.xlane.xlu0 %1001 }
 0x476   : > { %2061 = vrcp.f32 %v1002_v56 }
 0x479   : > { %v1004_v31 = vpop.xlane.xlu1 %1003 }
 0x47a   : > { %2063 = vrcp.f32 %v1004_v31 }
 0x47c   : > { %v2058_v33 = vpop.eup %2057 }
 0x47d   : > { %v1093_v59 = vmul.f32 %v2058_v33, %v3044_v58 }
 0x47e   : > { %v2060_v15 = vpop.eup %2059 }
 0x47f   : > { %v1094_v40 = vmul.f32 %v2060_v15, %v3047_v42 }
 0x480   : > { %v2062_v41 = vpop.eup %2061 }
 0x481   : > { %v1125_v63 = vpack.c.bf16 %v1094_v40, %v1093_v59  ;;  %v1006_v44 = vpop.xlane.xlu0 %1005  ;;  %v1095_v36 = vmul.f32 %v2062_v41, %v3052_v62 }
 0x482   : > { %2065 = vrcp.f32 %v1006_v44 }
 0x483   : > { %1815 = vmatprep.mubr.bf16.mxu0 %v1125_v63 }
 0x484   : > { %v2064_v20 = vpop.eup %2063 }
 0x485   : > { %v1096_v45 = vmul.f32 %v2064_v20, %v3055_v6  ;;  %v1010_v3 = vpop.xlane.xlu0 %1009 }
 0x487   : > { %v1126_v48 = vpack.c.bf16 %v1096_v45, %v1095_v36 }
 0x489   : > { %v1008_v50 = vpop.xlane.xlu1 %1007  ;;  %1816 = vmatmul.mubr.bf16.vlgmr.msra.gmra.mrb[4].mxu0 %v1126_v48 }
 0x48a   : > { %2067 = vrcp.f32 %v1008_v50 }
 0x48b   : > { %2069 = vrcp.f32 %v1010_v3 }
 0x48c   : > { %v2066_v54 = vpop.eup %2065 }
 0x48d   : > { %v1012_v24 = vpop.xlane.xlu1 %1011  ;;  %v1014_v58 = vpop.xlane.xlu0 %1013  ;;  %v1097_v6 = vmul.f32 %v2066_v54, %v3062_v28 }
 0x48e   : > { %2071 = vrcp.f32 %v1012_v24 }
 0x48f   : > { %2073 = vrcp.f32 %v1014_v58 }
 0x491   : > { %v1016_v42 = vpop.xlane.xlu1 %1015  ;;  %v1018_v0 = vpop.xlane.xlu0 %1017 }
 0x492   : > { %2075 = vrcp.f32 %v1016_v42 }
 0x493   : > { %2077 = vrcp.f32 %v1018_v0 }
 0x494   : > { %v2068_v57 = vpop.eup %2067 }
 0x495   : > { %v1020_v62 = vpop.xlane.xlu1 %1019  ;;  %v1022_v35 = vpop.xlane.xlu0 %1021  ;;  %v1098_v39 = vmul.f32 %v2068_v57, %v3073_v47 }
 0x496   : > { %v2070_v43 = vpop.eup %2069  ;;  %2079 = vrcp.f32 %v1020_v62 }
 0x497   : > { %v1127_v4 = vpack.c.bf16 %v1098_v39, %v1097_v6  ;;  %2081 = vrcp.f32 %v1022_v35  ;;  %v1099_v9 = vmul.f32 %v2070_v43, %v3067_v38 }
 0x498   : > { %v2072_v1 = vpop.eup %2071 }
 0x499   : > { %v1024_v29 = vpop.xlane.xlu1 %1023  ;;  %1819 = vmatprep.mubr.bf16.mxu0 %v1127_v4  ;;  %v1026_v22 = vpop.xlane.xlu0 %1025  ;;  %v1100_v49 = vmul.f32 %v2072_v1, %v3078_v55 }
 0x49a   : > { %v2074_v13 = vpop.eup %2073  ;;  %2083 = vrcp.f32 %v1024_v29 }
 0x49b   : > { %v1128_v12 = vpack.c.bf16 %v1100_v49, %v1099_v9  ;;  %2085 = vrcp.f32 %v1026_v22  ;;  %v1101_v30 = vmul.f32 %v2074_v13, %v3080_v8 }
 0x49c   : > { %v2076_v21 = vpop.eup %2075 }
 0x49d   : > { %v1028_v28 = vpop.xlane.xlu1 %1027  ;;  %1820 = vmatmul.mubr.bf16.gmra.mrb[8].mxu0 %v1128_v12  ;;  %v1030_v47 = vpop.xlane.xlu0 %1029  ;;  %v1102_v56 = vmul.f32 %v2076_v21, %v3088_v11 }
 0x49e   : > { %v2078_v31 = vpop.eup %2077  ;;  %2087 = vrcp.f32 %v1028_v28 }
 0x49f   : > { %v1129_v33 = vpack.c.bf16 %v1102_v56, %v1101_v30  ;;  %2089 = vrcp.f32 %v1030_v47  ;;  %v1103_v59 = vmul.f32 %v2078_v31, %v3086_v46 }
 0x4a0   : > { %v2080_v15 = vpop.eup %2079 }
 0x4a1   : > { %v1032_v38 = vpop.xlane.xlu1 %1031  ;;  %1823 = vmatprep.mubr.bf16.mxu0 %v1129_v33  ;;  %v1034_v55 = vpop.xlane.xlu0 %1033  ;;  %v1104_v40 = vmul.f32 %v2080_v15, %v3096_v16 }
 0x4a2   : > { %v2082_v63 = vpop.eup %2081  ;;  %2091 = vrcp.f32 %v1032_v38 }
 0x4a3   : > { %v1130_v41 = vpack.c.bf16 %v1104_v40, %v1103_v59  ;;  %2093 = vrcp.f32 %v1034_v55  ;;  %v1105_v20 = vmul.f32 %v2082_v63, %v3094_v53 }
 0x4a4   : > { %v2084_v44 = vpop.eup %2083 }
 0x4a5   : > { %v1036_v8 = vpop.xlane.xlu1 %1035  ;;  %1824 = vmatmul.mubr.bf16.gmra.mrb[12].mxu0 %v1130_v41  ;;  %v1038_v11 = vpop.xlane.xlu0 %1037  ;;  %v1106_v36 = vmul.f32 %v2084_v44, %v3104_v19 }
 0x4a6   : > { %v2086_v45 = vpop.eup %2085  ;;  %2095 = vrcp.f32 %v1036_v8 }
 0x4a7   : > { %v1131_v48 = vpack.c.bf16 %v1106_v36, %v1105_v20  ;;  %2097 = vrcp.f32 %v1038_v11  ;;  %v1107_v50 = vmul.f32 %v2086_v45, %v3102_v23  ;;  %v3201_v20 = vld [vmem:[#allocation13] sm:$0xf] }
 0x4a8   : > { %v2088_v3 = vpop.eup %2087 }
 0x4a9   : > { %v1040_v46 = vpop.xlane.xlu1 %1039  ;;  %1827 = vmatprep.mubr.bf16.mxu0 %v1131_v48  ;;  %v1042_v16 = vpop.xlane.xlu0 %1041  ;;  %v1108_v24 = vmul.f32 %v2088_v3, %v3112_v26 }
 0x4aa   : > { %v2090_v58 = vpop.eup %2089  ;;  %2099 = vrcp.f32 %v1040_v46 }
 0x4ab   : > { %v1132_v42 = vpack.c.bf16 %v1108_v24, %v1107_v50  ;;  %2101 = vrcp.f32 %v1042_v16  ;;  %v1109_v54 = vmul.f32 %v2090_v58, %v3110_v51 }
 0x4ac   : > { %v2092_v0 = vpop.eup %2091 }
 0x4ad   : > { %v1044_v53 = vpop.xlane.xlu1 %1043  ;;  %1828 = vmatmul.mubr.bf16.gmra.mrb[16].mxu0 %v1132_v42  ;;  %v1046_v19 = vpop.xlane.xlu0 %1045  ;;  %v1110_v57 = vmul.f32 %v2092_v0, %v3120_v27 }
 0x4ae   : > { %v2094_v62 = vpop.eup %2093  ;;  %2103 = vrcp.f32 %v1044_v53 }
 0x4af   : > { %v1133_v35 = vpack.c.bf16 %v1110_v57, %v1109_v54  ;;  %2105 = vrcp.f32 %v1046_v19  ;;  %v1111_v39 = vmul.f32 %v2094_v62, %v3118_v60 }
 0x4b0   : > { %v2096_v6 = vpop.eup %2095 }
 0x4b1   : > { %v1048_v23 = vpop.xlane.xlu1 %1047  ;;  %1831 = vmatprep.mubr.bf16.mxu0 %v1133_v35  ;;  %v1050_v26 = vpop.xlane.xlu0 %1049  ;;  %v1112_v43 = vmul.f32 %v2096_v6, %v3128_v34 }
 0x4b2   : > { %v2098_v4 = vpop.eup %2097  ;;  %2107 = vrcp.f32 %v1048_v23 }
 0x4b3   : > { %v1134_v1 = vpack.c.bf16 %v1112_v43, %v1111_v39  ;;  %2109 = vrcp.f32 %v1050_v26  ;;  %v1113_v27 = vmul.f32 %v2098_v4, %v3126_v52 }
 0x4b4   : > { %v2100_v29 = vpop.eup %2099 }
 0x4b5   : > { %v1052_v51 = vpop.xlane.xlu1 %1051  ;;  %1832 = vmatmul.mubr.bf16.gmra.mrb[20].mxu0 %v1134_v1  ;;  %v1114_v22 = vmul.f32 %v2100_v29, %v3136_v25  ;;  %v2102_v9 = vpop.eup %2101 }
 0x4b6   : > { %2111 = vrcp.f32 %v1052_v51  ;;  %v1054_v49 = vpop.xlane.xlu0 %1053  ;;  %v1115_v60 = vmul.f32 %v2102_v9, %v3134_v61 }
 0x4b7   : > { %v1135_v13 = vpack.c.bf16 %v1114_v22, %v1113_v27  ;;  %2113 = vrcp.f32 %v1054_v49 }
 0x4b8   : > { %v2104_v12 = vpop.eup %2103 }
 0x4b9   : > { %1835 = vmatprep.mubr.bf16.mxu0 %v1135_v13  ;;  %v1116_v34 = vmul.f32 %v2104_v12, %v3142_v5  ;;  %v2106_v21 = vpop.eup %2105 }
 0x4ba   : > { %v1058_v30 = vpop.xlane.xlu0 %1057  ;;  %v1117_v52 = vmul.f32 %v2106_v21, %v3140_v2 }
 0x4bb   : > { %v1136_v28 = vpack.c.bf16 %v1116_v34, %v1115_v60 }
 0x4bc   : > { %v2108_v47 = vpop.eup %2107 }
 0x4bd   : > { %v1056_v56 = vpop.xlane.xlu1 %1055  ;;  %1836 = vmatmul.mubr.bf16.gmra.mrb[24].mxu0 %v1136_v28  ;;  %v1118_v25 = vmul.f32 %v2108_v47, %v3150_v7  ;;  %v2110_v31 = vpop.eup %2109 }
 0x4be   : > { %2115 = vrcp.f32 %v1056_v56  ;;  %v1119_v61 = vmul.f32 %v2110_v31, %v3148_v10 }
 0x4bf   : > { %v1137_v33 = vpack.c.bf16 %v1118_v25, %v1117_v52  ;;  %2117 = vrcp.f32 %v1058_v30 }
 0x4c0   : > { %v2112_v15 = vpop.eup %2111 }
 0x4c1   : > { %v1060_v38 = vpop.xlane.xlu1 %1059  ;;  %1839 = vmatprep.mubr.bf16.mxu0 %v1137_v33  ;;  %v1120_v5 = vmul.f32 %v2112_v15, %v3156_v17  ;;  %v2114_v59 = vpop.eup %2113  ;;  %v1320_v17 = vld [vmem:[#allocation14] sm:$0xf] }
 0x4c2   : > { %2119 = vrcp.f32 %v1060_v38  ;;  %v1121_v2 = vmul.f32 %v2114_v59, %v3154_v14  ;;  %1718 = vmatmul.mubr.msk.bf16.vlgmr.msra.gmra.mrb[32].mxu1 %vm529_vm1, %v1320_v17 }
 0x4c3   : > { %v1138_v55 = vpack.c.bf16 %v1120_v5, %v1119_v61 }
 0x4c5   : > { %1840 = vmatmul.mubr.bf16.gmra.mrb[28].mxu0 %v1138_v55 }
 0x4c8   : > { %v2116_v40 = vpop.eup %2115 }
 0x4c9   : > { %v1122_v7 = vmul.f32 %v2116_v40, %v3163_v37  ;;  %v2118_v63 = vpop.eup %2117 }
 0x4ca   : > { %v1123_v8 = vmul.f32 %v2118_v63, %v3160_v32 }
 0x4cb   : > { %v1139_v41 = vpack.c.bf16 %v1122_v7, %v1121_v2 }
 0x4cc   : > { %v2120_v44 = vpop.eup %2119 }
 0x4cd   : > { %1843 = vmatprep.mubr.bf16.mxu0 %v1139_v41  ;;  %v1124_v11 = vmul.f32 %v2120_v44, %v3166_v18 }
 0x4cf   : > { %v1140_v10 = vpack.c.bf16 %v1124_v11, %v1123_v8 }
 0x4d1   : > { %1844 = vmatmul.mubr.bf16.gmra.mrb[32].mxu0 %v1140_v10 }
 0x4d2   : > { %1777 = vmatprep.mubr.msk.bf16.mxu0 %vm529_vm1, %v3201_v20 }
 0x55c   : > { %v1817_v14 = vpop.f32.mrb[4].mxu0 }
 0x55d   : > { %v1176_v37 = vpop.f32.mrb[5].mxu0 }
 0x55e   : > { %v1818_v36 = vpop.f32.mrb[6].mxu0 }
 0x55f   : > { %v1305_v45 = vpack.c.bf16 %v1818_v36, %v1817_v14  ;;  %v1179_v48 = vpop.f32.mrb[7].mxu0  ;;  %v1461_v14 = vpop.permute.xlu0 %1460 }
 0x560   : > { %v1304_v3 = vpack.c.bf16 %v1179_v48, %v1176_v37 }
 0x561   : > { %v1372_v34 = vsel %vm529_vm1, %v1305_v45, 0 }
 0x562   : > { %v1369_v27 = vsel %vm529_vm1, %v1304_v3, 0 }
 0x570   : > { %v1821_v46 = vpop.f32.mrb[8].mxu0 }
 0x571   : > { %v1192_v32 = vpop.f32.mrb[9].mxu0 }
 0x572   : > { %v1822_v16 = vpop.f32.mrb[10].mxu0 }
 0x573   : > { %v1307_v18 = vpack.c.bf16 %v1822_v16, %v1821_v46  ;;  %v1195_v50 = vpop.f32.mrb[11].mxu0 }
 0x574   : > { %v1306_v24 = vpack.c.bf16 %v1195_v50, %v1192_v32 }
 0x575   : > { %v1378_v15 = vsel %vm529_vm1, %v1307_v18, 0 }
 0x576   : > { %v1375_v25 = vsel %vm529_vm1, %v1306_v24, 0 }
 0x578   : > { %v1825_v58 = vpop.f32.mrb[12].mxu0 }
 0x579   : > { %v1208_v42 = vpop.f32.mrb[13].mxu0 }
 0x57a   : > { %v1826_v0 = vpop.f32.mrb[14].mxu0 }
 0x57b   : > { %v1309_v53 = vpack.c.bf16 %v1826_v0, %v1825_v58  ;;  %v1211_v19 = vpop.f32.mrb[15].mxu0 }
 0x57c   : > { %v1308_v54 = vpack.c.bf16 %v1211_v19, %v1208_v42 }
 0x57d   : > { %v1384_v40 = vsel %vm529_vm1, %v1309_v53, 0 }
 0x57e   : > { %v1381_v59 = vsel %vm529_vm1, %v1308_v54, 0 }
 0x580   : > { %v1829_v57 = vpop.f32.mrb[16].mxu0 }
 0x581   : > { %v1224_v62 = vpop.f32.mrb[17].mxu0 }
 0x582   : > { %v1830_v35 = vpop.f32.mrb[18].mxu0 }
 0x583   : > { %v1311_v6 = vpack.c.bf16 %v1830_v35, %v1829_v57  ;;  %v1227_v23 = vpop.f32.mrb[19].mxu0 }
 0x584   : > { %v1310_v26 = vpack.c.bf16 %v1227_v23, %v1224_v62 }
 0x585   : > { %v1390_v7 = vsel %vm529_vm1, %v1311_v6, 0 }
 0x586   : > { %v1387_v2 = vsel %vm529_vm1, %v1310_v26, 0 }
 0x588   : > { %v1833_v39 = vpop.f32.mrb[20].mxu0 }
 0x589   : > { %v1240_v43 = vpop.f32.mrb[21].mxu0 }
 0x58a   : > { %v1834_v4 = vpop.f32.mrb[22].mxu0 }
 0x58b   : > { %v1313_v1 = vpack.c.bf16 %v1834_v4, %v1833_v39  ;;  %v1243_v29 = vpop.f32.mrb[23].mxu0 }
 0x58c   : > { %v1312_v51 = vpack.c.bf16 %v1243_v29, %v1240_v43 }
 0x58e   : > { %1848 = vmatprep.subr.msk.bf16.mxu0 %vm529_vm1, %v1312_v51 }
 0x58f   : > { %1762 = vmatpush3.bf16.xpose.msra.mxu0 %v1369_v27 }
 0x590   : > { %v1837_v22 = vpop.f32.mrb[24].mxu0  ;;  %1849 = vmatprep.subr.msk.bf16.mxu0 %vm529_vm1, %v1313_v1 }
 0x591   : > { %v1256_v9 = vpop.f32.mrb[25].mxu0 }
 0x592   : > { %v1838_v49 = vpop.f32.mrb[26].mxu0 }
 0x593   : > { %v1315_v13 = vpack.c.bf16 %v1838_v49, %v1837_v22  ;;  %v1259_v12 = vpop.f32.mrb[27].mxu0 }
 0x594   : > { %v1314_v60 = vpack.c.bf16 %v1259_v12, %v1256_v9 }
 0x595   : > { %v1358_v63 = vpop.f32.mrb[32].mxu1 }
 0x596   : > { %v1360_v41 = vpop.f32.mrb[33].mxu1 }
 0x597   : > { %1764 = vmatpush3.bf16.xpose.msra.mxu0 %v1372_v34  ;;  %v1362_v44 = vpop.f32.mrb[34].mxu1 }
 0x598   : > { %v1841_v21 = vpop.f32.mrb[28].mxu0  ;;  %1850 = vmatprep.subr.msk.bf16.mxu0 %vm529_vm1, %v1314_v60  ;;  %v1363_v8 = vpop.f32.mrb[35].mxu1 }
 0x599   : > { %v1272_v28 = vpop.f32.mrb[29].mxu0 }
 0x59a   : > { %v1842_v47 = vpop.f32.mrb[30].mxu0 }
 0x59b   : > { %v1317_v30 = vpack.c.bf16 %v1842_v47, %v1841_v21  ;;  %v1275_v56 = vpop.f32.mrb[31].mxu0 }
 0x59c   : > { %v1316_v52 = vpack.c.bf16 %v1275_v56, %v1272_v28 }
 0x59f   : > { %1766 = vmatpush3.bf16.xpose.msra.mxu0 %v1375_v25 }
 0x5a0   : > { %1851 = vmatprep.subr.msk.bf16.mxu0 %vm529_vm1, %v1315_v13 }
 0x5a4   : > { %v1845_v31 = vpop.f32.mrb[32].mxu0 }
 0x5a5   : > { %v1288_v33 = vpop.f32.mrb[33].mxu0 }
 0x5a6   : > { %v1846_v38 = vpop.f32.mrb[34].mxu0 }
 0x5a7   : > { %v1319_v61 = vpack.c.bf16 %v1846_v38, %v1845_v31  ;;  %v1291_v5 = vpop.f32.mrb[35].mxu0  ;;  %1768 = vmatpush3.bf16.xpose.msra.mxu0 %v1378_v15 }
 0x5a8   : > { %v1318_v55 = vpack.c.bf16 %v1291_v5, %v1288_v33  ;;  %1852 = vmatprep.subr.msk.bf16.mxu0 %vm529_vm1, %v1316_v52 }
 0x5af   : > { %1770 = vmatpush3.bf16.xpose.msra.mxu0 %v1381_v59 }
 0x5b0   : > { %1853 = vmatprep.subr.msk.bf16.mxu0 %vm529_vm1, %v1317_v30 }
 0x5b7   : > { %1772 = vmatpush3.bf16.xpose.msra.mxu0 %v1384_v40 }
 0x5b8   : > { %1854 = vmatprep.subr.msk.bf16.mxu0 %vm529_vm1, %v1318_v55 }
 0x5bf   : > { %1774 = vmatpush3.bf16.xpose.msra.mxu0 %v1387_v2 }
 0x5c0   : > { %1855 = vmatprep.subr.msk.bf16.mxu0 %vm529_vm1, %v1319_v61 }
 0x5c7   : > { %1776 = vmatpush3.bf16.xpose.msra.mxu0 %v1390_v7 }
 0x5ce   : > { %1778 = vmatmul.mubr.msk.bf16.vlgmr.msra.gmra.mrb[36].mxu0 %vm529_vm1, %v3201_v20 }
 0x6a1   : > { %v1450_v11 = vpop.f32.mrb[36].mxu0 }
 0x6a2   : > { %v1451_v10 = vadd.f32 %v1450_v11, %v1358_v63  ;;  %v1452_v17 = vpop.f32.mrb[37].mxu0 }
 0x6a3   : > { %v1453_v37 = vadd.f32 %v1452_v17, %v1360_v41  ;;  %v1454_v36 = vpop.f32.mrb[38].mxu0 }
 0x6a4   : > { %v1463_v45 = vadd.f32 %v1461_v14, %v1451_v10  ;;  %v1455_v48 = vpop.f32.mrb[39].mxu0 }
 0x6a5   : > { %v1464_v3 = vadd.f32 %v1461_v14, %v1453_v37 }
 0x6a6   : > { %1465 = vst [vmem:[%s512_s17] sm:$0xff] %v1463_v45 }
 0x6a7   : > { %1466 = vst [vmem:[%s512_s17 + $0x8] sm:$0xff] %v1464_v3 }
 0x6a8   : > { %2392 = shalt.err (!%p2389_p8)
}
 0x6a9   : > { %s2393_s9 = scalar_lea.hbm %s3229_s24, 256  ;;  %s2397_s26 = scalar_lea.hbm %s3355_s23, 512 }
 0x6aa   : > { %p2394_p6 = scmp.ne.s32.totalorder %s3229_s24, %s2393_s9  ;;  %p2398_p13 = scmp.lt.u32.totalorder %s3229_s24, %s3355_s23 }
 0x6ab   : > { %p2399_p11 = scmp.lt.u32.totalorder %s2397_s26, %s2393_s9  ;;  %p2401_p2 = scmp.lt.u32.totalorder %s2393_s9, %s3229_s24 }
 0x6ac   : > { %p2395_p3 = pnand %p2394_p6, %p3356_p4 }
 0x6ad   : > { %p2400_p1 = por %p2399_p11, %p2398_p13 }
 0x6ae   : > { %p2396_p12 = pneg %p2395_p3 }
 0x6af   : > { %p2402_p7 = por %p2401_p2, %p2400_p1 }
 0x6b1   : > { %p2403_p10 = pnand %p2402_p7, %p2396_p12 }
 0x6b3   : > { %2406 = shalt.err (!%p2403_p10)
}
 0x6b4   : > { %1886 = dma.vmem_to_hbm [thread:$0]  (%p3356_p4), %s3231_s19, 256, %s3229_s24, %s1468_s18  }
 0x6b5 PF: > { %s3357_s3 = sld [smem:[#allocation24_spill]]  ;;  %s3358_s27 = sld [smem:[#allocation31_spill]] }
 0x6b6   : > { %s3359_s15 = sld [smem:[#allocation27_spill]] }
 0x6bb   : > { %s1496_s28 = sand.u32 1, %s3357_s3   ;;  %p3360_p5 = scmp.ne.s32.totalorder %s3358_s27, 0 }
 0x6bc   : > { %p3361_p9 = scmp.ge.s32.totalorder %s3359_s15, 2  ;;  %s1497_s1 = scalar_lea.sflag [#allocation4], %s1496_s28 }
 0x6be   : > { %p1918_p0 = pnand %p3361_p9, %p3360_p5 }
 0x6c0   : > { %2452 = dma.done.wait (!%p1918_p0), %s1497_s1, 256  }
 0x6c1   : > { %2454 = vsyncadd (!%p1918_p0), %s1497_s1, 4294967040  ;;  %s31_s14 = sadd.s32 1, %s3359_s15   ;;  %s3362_s17 = sld [smem:[#allocation25_spill]] }
 0x6c2   : > { %p28_p8 = scmp.ge.s32.totalorder %s31_s14, 4   ;;  %s3363_s11 = sld [smem:[#allocation30_spill]] }
 0x6c3   : > { %s3364_s29 = sld [smem:[#allocation28_spill]]  ;;  %s3365_s30 = smov %s2461_s10 }
 0x6c4   : > { %s3367_s12 = smov %s2473_s13  ;;  %30 = sbr.rel (!%p28_p8) target bundleno = 17 (0x11), region = 149 }
 0x6c7   : > { %s3366_s10 = smov %s3362_s17 }
 0x6c9   : > { %s3368_s13 = smov %s3364_s29 }
 0x6cb   :  { %1502 = vsyncpa [#allocation3], 1 }
 0x6cc   :  { %1504 = vsyncpa [#allocation3 + $0x1], 1 }
 0x6cd   :  { %1505 = vsyncpa [#allocation6], 1 }
 0x6ce   :  { %1507 = vsyncpa [#allocation6 + $0x1], 1 }
 0x6cf   :  { %1508 = vsyncpa [#allocation9], 1 }
 0x6d0   :  { %1509 = vsyncpa [#allocation12], 1 }
 0x6d1   :  { %1510 = vsyncpa [#allocation15], 1 }
 0x6d2   :  { %1511 = vsyncpa [#allocation4], 1 }
 0x6d3   :  { %1513 = vsyncpa [#allocation4 + $0x1], 1 }

</bundles_post_ra>
